<compile_context>
chip_gen: v7x
topology: tpu7x:2x2x1
jax: 0.10.0
libtpu: 0.0.40
codegen_flags: <defaults>
</compile_context>

<pallas_src>
import functools

import jax
import jax.numpy as jnp
from jax import lax
from jax.experimental import pallas as pl
from jax.experimental.pallas import tpu as pltpu


# ---------------------------------------------------------------------------
# Chip detection (one-time): TensorCores per chip and per-core VMEM bytes.
# ---------------------------------------------------------------------------
@functools.lru_cache(maxsize=None)
def _detect_tpu():
    try:
        kind = jax.devices()[0].device_kind.lower()
    except Exception:
        kind = ""
    if "v7" in kind or "7x" in kind:
        return 2, 64 * 1024 * 1024          # v7x: 2 TCs, 64 MiB VMEM per TC
    if any(tag in kind for tag in ("v4", "v5", "v6", "lite")):
        return 1, 128 * 1024 * 1024          # v4/v5e/v5p/v6e: 1 TC, 128 MiB
    return 1, 64 * 1024 * 1024               # unknown: be conservative


# ---------------------------------------------------------------------------
# Kernel
# ---------------------------------------------------------------------------
def channel_mixer_kernel(h_ref, xs_ref, ln_ref, wig_ref, wout_ref,
                         out_ref, xso_ref):
    # h_ref:    (tB, T, D)            hidden_state_in block (f32)
    # xs_ref:   (tB, D)               carried x_state
    # ln_ref:   (2, D)                rows = [gamma, beta]
    # wig_ref:  (2D, d_ffn_pad + D)   bf16; token-shift-folded [W_in | W_gate]
    # wout_ref: (d_ffn_pad, D)        bf16
    # out_ref:  (tB, T, D),  xso_ref: (tB, D)
    h = h_ref[...].astype(jnp.float32)
    xs = xs_ref[...].astype(jnp.float32)
    ln = ln_ref[...].astype(jnp.float32)
    gamma, beta = ln[0:1, :], ln[1:2, :]

    tB, T, D = h.shape
    M = tB * T
    d_ffn_pad = wout_ref.shape[0]

    # --- LayerNorm (prenorm), eps = 1e-5 (PyTorch default) ---
    mean = jnp.mean(h, axis=-1, keepdims=True)
    c = h - mean
    var = jnp.mean(jnp.square(c), axis=-1, keepdims=True)
    x = c * lax.rsqrt(var + 1e-5)
    x = x * gamma + beta                                     # (tB, T, D)

    # x_state_out = last normalized token of every sequence.
    xso_ref[...] = x[:, T - 1:T, :].reshape(tB, D).astype(xso_ref.dtype)

    # --- token shift: previous token within each sequence, x_state at t == 0.
    # Roll is on the XLU; the wrap row (t == 0) is replaced from x_state, so
    # cross-sequence leakage of the flattened roll is masked out.
    x_roll = pltpu.roll(x.reshape(M, D), shift=1, axis=0).reshape(tB, T, D)
    t_pos = lax.broadcasted_iota(jnp.int32, (1, T, 1), 1)
    x_prev = jnp.where(t_pos == 0, xs[:, None, :], x_roll)   # (tB, T, D)
    diff = x - x_prev

    # --- token-shift folded into weights: one bf16 matmul with K = 2*D ---
    lhs = jnp.concatenate([x_prev, diff], axis=-1).reshape(M, 2 * D)
    lhs = lhs.astype(jnp.bfloat16)

    ig = jnp.dot(lhs, wig_ref[...], preferred_element_type=jnp.float32)
    hidden = jnp.square(jnp.maximum(ig[:, :d_ffn_pad], 0.0)).astype(jnp.bfloat16)
    gate = ig[:, d_ffn_pad:]                                  # (M, D) f32

    ffn = jnp.dot(hidden, wout_ref[...], preferred_element_type=jnp.float32)
    out = ffn * jax.nn.sigmoid(gate)                          # (M, D) f32

    out_ref[...] = (h + out.reshape(tB, T, D)).astype(out_ref.dtype)


# ---------------------------------------------------------------------------
# Tiling policy
# ---------------------------------------------------------------------------
def _pick_batch_tile(B, T, D, d_ffn_pad, weight_bytes, vmem_limit, cores):
    """Largest batch tile such that:
       - the grid keeps every TensorCore busy on multi-TC chips (v7x only),
       - rows (MXU M dim) stays <= 1024 (diminishing returns past that),
       - the per-step f32 working set fits the per-TC VMEM budget after the
         resident (per-TC replicated) weights are subtracted."""
    n_tot = d_ffn_pad + D
    budget = vmem_limit - weight_bytes
    best = 1
    for tB in range(1, B + 1):
        if B % tB:
            continue
        if cores >= 2 and B >= cores and B // tB < cores:
            continue                      # multi-TC chips only
        rows = tB * T
        if rows > 1024:
            continue
        # double-buffered in/out blocks + LN / token-shift intermediates
        # (~12x rows*D f32) + (rows, d_ffn_pad + D) matmul result f32 + bf16
        # copies (~8 bytes per element of the wide intermediate).
        work = rows * D * 4 * 12 + rows * n_tot * 8
        if work > budget:
            continue
        best = tB
    return best


# ---------------------------------------------------------------------------
# pallas_call wrapper
# ---------------------------------------------------------------------------
@functools.partial(jax.jit, static_argnames=("single_buffer_weights",))
def _channel_mixer_call(h, xs, ln, w_ig, w_out, *, single_buffer_weights):
    B, T, D = h.shape
    d_ffn_pad = w_out.shape[0]
    n_tot = w_ig.shape[1]

    cores, vmem_phys = _detect_tpu()
    vmem_limit = int(min(vmem_phys * 0.80, 112 * 1024 * 1024))

    nbuf = 1 if single_buffer_weights else 2
    weight_bytes = nbuf * (w_ig.size * 2 + w_out.size * 2 + ln.size * 4)

    tB = _pick_batch_tile(B, T, D, d_ffn_pad, weight_bytes, vmem_limit, cores)
    grid = (B // tB,)

    inv_kwargs = {"pipeline_mode": pl.Buffered(1)} if single_buffer_weights else {}

    def invariant(shape):
        return pl.BlockSpec(shape, lambda *_: (0,) * len(shape), **inv_kwargs)

    hbytes = h.dtype.itemsize
    cost = pl.CostEstimate(
        flops=2 * B * T * (2 * D * n_tot + d_ffn_pad * D),
        transcendentals=B * T * (D + 1),          # sigmoid per channel + rsqrt
        bytes_accessed=(2 * B * T * D + 2 * B * D) * hbytes
                       + 2 * (w_ig.size + w_out.size) + ln.size * 4,
    )

    return pl.pallas_call(
        channel_mixer_kernel,
        out_shape=(
            jax.ShapeDtypeStruct((B, T, D), h.dtype),
            jax.ShapeDtypeStruct((B, D), h.dtype),
        ),
        grid_spec=pltpu.PrefetchScalarGridSpec(
            num_scalar_prefetch=0,
            grid=grid,
            in_specs=[
                pl.BlockSpec((tB, T, D), lambda b: (b, 0, 0)),  # hidden_state_in
                pl.BlockSpec((tB, D), lambda b: (b, 0)),        # x_state
                invariant((2, D)),                              # [gamma, beta]
                invariant((2 * D, n_tot)),                      # folded W_in|W_gate
                invariant((d_ffn_pad, D)),                      # W_out
            ],
            out_specs=[
                pl.BlockSpec((tB, T, D), lambda b: (b, 0, 0)),  # new hidden state
                pl.BlockSpec((tB, D), lambda b: (b, 0)),        # x_state_out
            ],
        ),
        compiler_params=pltpu.CompilerParams(
            dimension_semantics=("parallel",),
            vmem_limit_bytes=vmem_limit,
        ),
        cost_estimate=cost,
    )(h, xs, ln, w_ig, w_out)


# ---------------------------------------------------------------------------
# Public wrapper: weight prep (pad / fold / bf16 cast) + cached Buffered probe
# ---------------------------------------------------------------------------
_BUFFERED1_OK = None     # None = unknown, probed once on the first call


def _prepare_weights(gamma, beta, ts_in, ts_gate, w_in, w_out, w_gate):
    D, d_ffn = w_in.shape
    d_ffn_pad = ((d_ffn + 127) // 128) * 128
    pad = d_ffn_pad - d_ffn
    # Zero-padding is exact: relu(0)^2 = 0 and zero W_out rows contribute 0.
    w_in_p = jnp.pad(w_in, ((0, 0), (0, pad)))
    w_out_p = jnp.pad(w_out, ((0, pad), (0, 0)))
    ts_in = ts_in.reshape(-1)
    ts_gate = ts_gate.reshape(-1)
    # Fold token-shift:  lerp(prev, x, ts) @ W = prev @ W + diff @ (ts[:,None]*W)
    w_in_f = jnp.concatenate([w_in_p, ts_in[:, None] * w_in_p], axis=0)       # (2D, d_ffn_pad)
    w_gate_f = jnp.concatenate([w_gate, ts_gate[:, None] * w_gate], axis=0)   # (2D, D)
    w_ig = jnp.concatenate([w_in_f, w_gate_f], axis=1).astype(jnp.bfloat16)   # (2D, d_ffn_pad+D)
    w_out_b = w_out_p.astype(jnp.bfloat16)
    ln = jnp.stack([gamma.reshape(-1), beta.reshape(-1)], axis=0)             # (2, D)
    return ln, w_ig, w_out_b


def channel_mixer(hidden_state_in, x_state, gamma, beta, ts_in, ts_gate,
                  w_in, w_out, w_gate):
    """Weights are stored pre-transposed (x @ W layout, i.e. nn.Linear.weight.T)."""
    global _BUFFERED1_OK
    ln, w_ig, w_out_b = _prepare_weights(gamma, beta, ts_in, ts_gate,
                                         w_in, w_out, w_gate)
    args = (hidden_state_in, x_state, ln, w_ig, w_out_b)
    if _BUFFERED1_OK is None:
        try:
            res = _channel_mixer_call(*args, single_buffer_weights=True)
            jax.block_until_ready(res)
            _BUFFERED1_OK = True
            return res
        except Exception:
            # This JAX build rejects pl.Buffered(1); cache the decision so the
            # fallback compile only ever happens once.
            _BUFFERED1_OK = False
    return _channel_mixer_call(*args, single_buffer_weights=_BUFFERED1_OK)


# ---------------------------------------------------------------------------
# References
# ---------------------------------------------------------------------------
def reference_folded(hidden_state_in, x_state, gamma, beta, ts_in, ts_gate,
                     w_in, w_out, w_gate):
    """Pure-JAX reference mirroring the kernel's numerical policy exactly
    (bf16 MXU inputs, f32 accumulation, token-shift weight fold)."""
    ln, w_ig, w_out_b = _prepare_weights(gamma, beta, ts_in, ts_gate,
                                         w_in, w_out, w_gate)
    d_ffn_pad = w_out_b.shape[0]
    h = hidden_state_in.astype(jnp.float32)
    mean = jnp.mean(h, axis=-1, keepdims=True)
    var = jnp.mean(jnp.square(h - mean), axis=-1, keepdims=True)
    x = (h - mean) * lax.rsqrt(var + 1e-5) * ln[0] + ln[1]
    x_state_out = x[:, -1]
    x_prev = jnp.concatenate([x_state[:, None, :].astype(jnp.float32), x[:, :-1]], axis=1)
    lhs = jnp.concatenate([x_prev, x - x_prev], axis=-1).astype(jnp.bfloat16)
    ig = jnp.dot(lhs, w_ig, preferred_element_type=jnp.float32)
    hidden = jnp.square(jnp.maximum(ig[..., :d_ffn_pad], 0.0)).astype(jnp.bfloat16)
    gate = ig[..., d_ffn_pad:]
    ffn = jnp.dot(hidden, w_out_b, preferred_element_type=jnp.float32)
    out = ffn * jax.nn.sigmoid(gate)
    return hidden_state_in + out, x_state_out.astype(hidden_state_in.dtype)


def reference_f32(hidden_state_in, x_state, gamma, beta, ts_in, ts_gate,
                  w_in, w_out, w_gate):
    """Faithful f32 reference of the PyTorch forward (no bf16, no fold)."""
    h = hidden_state_in.astype(jnp.float32)
    mean = jnp.mean(h, axis=-1, keepdims=True)
    var = jnp.mean(jnp.square(h - mean), axis=-1, keepdims=True)
    x = (h - mean) * lax.rsqrt(var + 1e-5) * gamma + beta
    x_state_out = x[:, -1]
    x_prev = jnp.concatenate([x_state[:, None, :].astype(jnp.float32), x[:, :-1]], axis=1)
    x_in = x_prev + ts_in * (x - x_prev)
    x_gate = x_prev + ts_gate * (x - x_prev)
    hidden = jnp.square(jnp.maximum(x_in @ w_in, 0.0))
    out = (hidden @ w_out) * jax.nn.sigmoid(x_gate @ w_gate)
    return hidden_state_in + out, x_state_out.astype(hidden_state_in.dtype)


# ---------------------------------------------------------------------------
if __name__ == "__main__":
    # Small config consistent with the module: d_model=128 -> d_ffn=448 (padded to 512)
    B, T, D = 2, 8, 128
    d_ffn = int(D * 3.5) // 32 * 32  # 448

    key = jax.random.PRNGKey(0)
    ks = jax.random.split(key, 9)
    hidden_state_in = jax.random.normal(ks[0], (B, T, D), jnp.float32)
    x_state = jax.random.normal(ks[1], (B, D), jnp.float32)
    gamma = 1.0 + 0.1 * jax.random.normal(ks[2], (D,), jnp.float32)
    beta = 0.1 * jax.random.normal(ks[3], (D,), jnp.float32)
    ts_in = jax.random.uniform(ks[4], (D,), jnp.float32)
    ts_gate = jax.random.uniform(ks[5], (D,), jnp.float32)
    # Linear weights (stored transposed vs. PyTorch so kernel does x @ W).
    w_in = jax.random.normal(ks[6], (D, d_ffn), jnp.float32) * (1.0 / jnp.sqrt(D))
    w_out = jax.random.normal(ks[7], (d_ffn, D), jnp.float32) * (1.0 / jnp.sqrt(d_ffn))
    w_gate = jax.random.normal(ks[8], (D, D), jnp.float32) * (1.0 / jnp.sqrt(D))

    out, xso = channel_mixer(hidden_state_in, x_state, gamma, beta,
                             ts_in, ts_gate, w_in, w_out, w_gate)
    out = jax.block_until_ready(out)
    xso = jax.block_until_ready(xso)

    # Tight check vs. a reference with the identical bf16/f32 policy.
    r_out, r_xso = reference_folded(hidden_state_in, x_state, gamma, beta,
                                    ts_in, ts_gate, w_in, w_out, w_gate)
    assert jnp.allclose(out, r_out, atol=1e-2, rtol=1e-2), "hidden mismatch (folded ref)"
    assert jnp.allclose(xso, r_xso, atol=1e-2, rtol=1e-2), "x_state mismatch (folded ref)"

    # Loose sanity check vs. the faithful f32 PyTorch semantics (bf16 MXU
    # inputs introduce ~1% relative deviation; this catches gross bugs).
    f_out, f_xso = reference_f32(hidden_state_in, x_state, gamma, beta,
                                 ts_in, ts_gate, w_in, w_out, w_gate)
    assert jnp.allclose(out, f_out, atol=2e-1, rtol=1e-1), "hidden mismatch (f32 ref)"
    assert jnp.allclose(xso, f_xso, atol=1e-2, rtol=1e-2), "x_state mismatch (f32 ref)"

    print("KERNEL_OK")
</pallas_src>

<mosaic_0001>
module attributes {stable_mosaic.version = 11 : i64} {
  func.func @channel_mixer_kernel(%arg0: i32, %arg1: memref<2x8x128xf32, #tpu.memory_space<vmem>>, %arg2: memref<2x128xf32, #tpu.memory_space<vmem>>, %arg3: memref<2x128xf32, #tpu.memory_space<vmem>>, %arg4: memref<256x640xbf16, #tpu.memory_space<vmem>>, %arg5: memref<512x128xbf16, #tpu.memory_space<vmem>>, %arg6: memref<2x8x128xf32, #tpu.memory_space<vmem>>, %arg7: memref<2x128xf32, #tpu.memory_space<vmem>>) attributes {dimension_semantics = [#tpu.dimension_semantics<parallel>], iteration_bounds = array<i64: 1>, scalar_prefetch = 0 : i64, scratch_operands = 0 : i64, tpu.core_type = #tpu.core_type<tc>, window_params = [{transform_indices = @transform_0, window_bounds = array<i64: 2, 8, 128>}, {transform_indices = @transform_1, window_bounds = array<i64: 2, 128>}, {pipeline_mode = #tpu.pipeline_mode<synchronous>, transform_indices = @transform_2, window_bounds = array<i64: 2, 128>}, {pipeline_mode = #tpu.pipeline_mode<synchronous>, transform_indices = @transform_3, window_bounds = array<i64: 256, 640>}, {pipeline_mode = #tpu.pipeline_mode<synchronous>, transform_indices = @transform_4, window_bounds = array<i64: 512, 128>}, {transform_indices = @transform_5, window_bounds = array<i64: 2, 8, 128>}, {transform_indices = @transform_6, window_bounds = array<i64: 2, 128>}]} {
    %c0 = arith.constant 0 : index
    %c0_0 = arith.constant 0 : index
    %c0_1 = arith.constant 0 : index
    %0 = vector.load %arg1[%c0, %c0_0, %c0_1] : memref<2x8x128xf32, #tpu.memory_space<vmem>>, vector<2x8x128xf32>
    %c0_2 = arith.constant 0 : index
    %c0_3 = arith.constant 0 : index
    %1 = vector.load %arg2[%c0_2, %c0_3] : memref<2x128xf32, #tpu.memory_space<vmem>>, vector<2x128xf32>
    %c0_4 = arith.constant 0 : index
    %c0_5 = arith.constant 0 : index
    %2 = vector.load %arg3[%c0_4, %c0_5] : memref<2x128xf32, #tpu.memory_space<vmem>>, vector<2x128xf32>
    %3 = vector.extract_strided_slice %2 {offsets = [0, 0], sizes = [1, 128], strides = [1, 1]} : vector<2x128xf32> to vector<1x128xf32>
    %4 = vector.extract_strided_slice %2 {offsets = [1, 0], sizes = [1, 128], strides = [1, 1]} : vector<2x128xf32> to vector<1x128xf32>
    %cst = arith.constant dense<0.000000e+00> : vector<2x8xf32>
    %5 = vector.multi_reduction <add>, %0, %cst [2] : vector<2x8x128xf32> to vector<2x8xf32>
    %6 = vector.shape_cast %5 : vector<2x8xf32> to vector<2x8x1xf32>
    %cst_6 = arith.constant 1.280000e+02 : f32
    %7 = vector.broadcast %cst_6 : f32 to vector<2x8x1xf32>
    %8 = arith.divf %6, %7 : vector<2x8x1xf32>
    %9 = vector.broadcast %8 : vector<2x8x1xf32> to vector<2x8x128xf32>
    %10 = arith.subf %0, %9 : vector<2x8x128xf32>
    %11 = arith.mulf %10, %10 : vector<2x8x128xf32>
    %cst_7 = arith.constant dense<0.000000e+00> : vector<2x8xf32>
    %12 = vector.multi_reduction <add>, %11, %cst_7 [2] : vector<2x8x128xf32> to vector<2x8xf32>
    %13 = vector.shape_cast %12 : vector<2x8xf32> to vector<2x8x1xf32>
    %cst_8 = arith.constant 1.280000e+02 : f32
    %14 = vector.broadcast %cst_8 : f32 to vector<2x8x1xf32>
    %15 = arith.divf %13, %14 : vector<2x8x1xf32>
    %cst_9 = arith.constant 9.99999974E-6 : f32
    %16 = vector.broadcast %cst_9 : f32 to vector<2x8x1xf32>
    %17 = arith.addf %15, %16 : vector<2x8x1xf32>
    %18 = math.rsqrt %17 : vector<2x8x1xf32>
    %19 = vector.broadcast %18 : vector<2x8x1xf32> to vector<2x8x128xf32>
    %20 = arith.mulf %10, %19 : vector<2x8x128xf32>
    %21 = vector.shape_cast %3 : vector<1x128xf32> to vector<1x1x128xf32>
    %22 = vector.broadcast %21 : vector<1x1x128xf32> to vector<2x8x128xf32>
    %23 = arith.mulf %20, %22 : vector<2x8x128xf32>
    %24 = vector.shape_cast %4 : vector<1x128xf32> to vector<1x1x128xf32>
    %25 = vector.broadcast %24 : vector<1x1x128xf32> to vector<2x8x128xf32>
    %26 = arith.addf %23, %25 : vector<2x8x128xf32>
    %27 = vector.extract_strided_slice %26 {offsets = [0, 7, 0], sizes = [2, 1, 128], strides = [1, 1, 1]} : vector<2x8x128xf32> to vector<2x1x128xf32>
    %28 = vector.shape_cast %27 : vector<2x1x128xf32> to vector<2x128xf32>
    %c0_10 = arith.constant 0 : index
    %c0_11 = arith.constant 0 : index
    %29 = vector.load %arg7[%c0_10, %c0_11] : memref<2x128xf32, #tpu.memory_space<vmem>>, vector<2x128xf32>
    tpu.vector_store %arg7[%c0_10, %c0_11], %28 {strides = array<i32>} : memref<2x128xf32, #tpu.memory_space<vmem>>, vector<2x128xf32>,
    %30 = vector.shape_cast %26 : vector<2x8x128xf32> to vector<16x128xf32>
    %c1_i32 = arith.constant 1 : i32
    %31 = tpu.dynamic_rotate %30 by %c1_i32 dim 0 : vector<16x128xf32>, i32 -> vector<16x128xf32>
    %32 = vector.shape_cast %31 : vector<16x128xf32> to vector<2x8x128xf32>
    %33 = tpu.iota {dimensions = array<i32: 1>} : vector<1x8x1xi32>
    %c0_i32 = arith.constant 0 : i32
    %34 = vector.broadcast %c0_i32 : i32 to vector<1x8x1xi32>
    %35 = arith.cmpi eq, %33, %34 : vector<1x8x1xi32>
    %36 = vector.shape_cast %1 : vector<2x128xf32> to vector<2x1x128xf32>
    %37 = vector.shape_cast %35 : vector<1x8x1xi1> to vector<1x8x1xi1>
    %38 = vector.broadcast %37 : vector<1x8x1xi1> to vector<2x8x128xi1>
    %39 = vector.shape_cast %36 : vector<2x1x128xf32> to vector<2x1x128xf32>
    %40 = vector.broadcast %39 : vector<2x1x128xf32> to vector<2x8x128xf32>
    %41 = arith.select %38, %40, %32 : vector<2x8x128xi1>, vector<2x8x128xf32>
    %42 = arith.subf %26, %41 : vector<2x8x128xf32>
    %43 = tpu.concatenate %41, %42 in 2 : vector<2x8x128xf32>, vector<2x8x128xf32> -> vector<2x8x256xf32>
    %44 = vector.shape_cast %43 : vector<2x8x256xf32> to vector<16x256xf32>
    %45 = arith.truncf %44 : vector<16x256xf32> to vector<16x256xbf16>
    %c0_12 = arith.constant 0 : index
    %c0_13 = arith.constant 0 : index
    %46 = vector.load %arg4[%c0_12, %c0_13] : memref<256x640xbf16, #tpu.memory_space<vmem>>, vector<256x640xbf16>
    %cst_14 = arith.constant dense<0.000000e+00> : vector<16x640xf32>
    %47 = tpu.matmul %45, %46, %cst_14 {dimension_numbers = #tpu.dot_dimension_numbers<[1], [0], [0], [1], [0, 0, 1, 1], [], []>} : vector<16x256xbf16>, vector<256x640xbf16>, vector<16x640xf32> -> vector<16x640xf32>
    %48 = vector.extract_strided_slice %47 {offsets = [0, 0], sizes = [16, 512], strides = [1, 1]} : vector<16x640xf32> to vector<16x512xf32>
    %cst_15 = arith.constant 0.000000e+00 : f32
    %49 = vector.broadcast %cst_15 : f32 to vector<16x512xf32>
    %50 = arith.maximumf %48, %49 : vector<16x512xf32>
    %51 = arith.mulf %50, %50 : vector<16x512xf32>
    %52 = arith.truncf %51 : vector<16x512xf32> to vector<16x512xbf16>
    %53 = vector.extract_strided_slice %47 {offsets = [0, 512], sizes = [16, 128], strides = [1, 1]} : vector<16x640xf32> to vector<16x128xf32>
    %c0_16 = arith.constant 0 : index
    %c0_17 = arith.constant 0 : index
    %54 = vector.load %arg5[%c0_16, %c0_17] : memref<512x128xbf16, #tpu.memory_space<vmem>>, vector<512x128xbf16>
    %cst_18 = arith.constant dense<0.000000e+00> : vector<16x128xf32>
    %55 = tpu.matmul %52, %54, %cst_18 {dimension_numbers = #tpu.dot_dimension_numbers<[1], [0], [0], [1], [0, 0, 1, 1], [], []>} : vector<16x512xbf16>, vector<512x128xbf16>, vector<16x128xf32> -> vector<16x128xf32>
    %56 = arith.negf %53 : vector<16x128xf32>
    %57 = math.exp %56 : vector<16x128xf32>
    %cst_19 = arith.constant 1.000000e+00 : f32
    %58 = vector.broadcast %cst_19 : f32 to vector<16x128xf32>
    %59 = arith.addf %58, %57 : vector<16x128xf32>
    %60 = arith.divf %58, %59 : vector<16x128xf32>
    %61 = arith.mulf %55, %60 : vector<16x128xf32>
    %62 = vector.shape_cast %61 : vector<16x128xf32> to vector<2x8x128xf32>
    %63 = arith.addf %0, %62 : vector<2x8x128xf32>
    %c0_20 = arith.constant 0 : index
    %c0_21 = arith.constant 0 : index
    %c0_22 = arith.constant 0 : index
    %64 = vector.load %arg6[%c0_20, %c0_21, %c0_22] : memref<2x8x128xf32, #tpu.memory_space<vmem>>, vector<2x8x128xf32>
    tpu.vector_store %arg6[%c0_20, %c0_21, %c0_22], %63 {strides = array<i32>} : memref<2x8x128xf32, #tpu.memory_space<vmem>>, vector<2x8x128xf32>,
    return
  }
  func.func @transform_0(%arg0: i32) -> (i32, i32, i32) {
    %c0_i32 = arith.constant 0 : i32
    %c0_i32_0 = arith.constant 0 : i32
    %c0_i32_1 = arith.constant 0 : i32
    return %arg0, %c0_i32, %c0_i32_0 : i32, i32, i32
  }
  func.func @transform_1(%arg0: i32) -> (i32, i32) {
    %c0_i32 = arith.constant 0 : i32
    %c0_i32_0 = arith.constant 0 : i32
    return %arg0, %c0_i32 : i32, i32
  }
  func.func @transform_2(%arg0: i32) -> (i32, i32) {
    %c0_i32 = arith.constant 0 : i32
    %c0_i32_0 = arith.constant 0 : i32
    %c0_i32_1 = arith.constant 0 : i32
    return %c0_i32, %c0_i32_0 : i32, i32
  }
  func.func @transform_3(%arg0: i32) -> (i32, i32) {
    %c0_i32 = arith.constant 0 : i32
    %c0_i32_0 = arith.constant 0 : i32
    %c0_i32_1 = arith.constant 0 : i32
    return %c0_i32, %c0_i32_0 : i32, i32
  }
  func.func @transform_4(%arg0: i32) -> (i32, i32) {
    %c0_i32 = arith.constant 0 : i32
    %c0_i32_0 = arith.constant 0 : i32
    %c0_i32_1 = arith.constant 0 : i32
    return %c0_i32, %c0_i32_0 : i32, i32
  }
  func.func @transform_5(%arg0: i32) -> (i32, i32, i32) {
    %c0_i32 = arith.constant 0 : i32
    %c0_i32_0 = arith.constant 0 : i32
    %c0_i32_1 = arith.constant 0 : i32
    return %arg0, %c0_i32, %c0_i32_0 : i32, i32, i32
  }
  func.func @transform_6(%arg0: i32) -> (i32, i32) {
    %c0_i32 = arith.constant 0 : i32
    %c0_i32_0 = arith.constant 0 : i32
    return %arg0, %c0_i32 : i32, i32
  }
}

module attributes {stable_mosaic.version = 11 : i64} {
  func.func @channel_mixer_kernel(%arg0: i32, %arg1: memref<2x8x128xf32, #tpu.memory_space<vmem>>, %arg2: memref<2x128xf32, #tpu.memory_space<vmem>>, %arg3: memref<2x128xf32, #tpu.memory_space<vmem>>, %arg4: memref<256x640xbf16, #tpu.memory_space<vmem>>, %arg5: memref<512x128xbf16, #tpu.memory_space<vmem>>, %arg6: memref<2x8x128xf32, #tpu.memory_space<vmem>>, %arg7: memref<2x128xf32, #tpu.memory_space<vmem>>) attributes {dimension_semantics = [#tpu.dimension_semantics<parallel>], iteration_bounds = array<i64: 1>, scalar_prefetch = 0 : i64, scratch_operands = 0 : i64, tpu.core_type = #tpu.core_type<tc>, window_params = [{transform_indices = @transform_0, window_bounds = array<i64: 2, 8, 128>}, {transform_indices = @transform_1, window_bounds = array<i64: 2, 128>}, {pipeline_mode = #tpu.pipeline_mode<synchronous>, transform_indices = @transform_2, window_bounds = array<i64: 2, 128>}, {pipeline_mode = #tpu.pipeline_mode<synchronous>, transform_indices = @transform_3, window_bounds = array<i64: 256, 640>}, {pipeline_mode = #tpu.pipeline_mode<synchronous>, transform_indices = @transform_4, window_bounds = array<i64: 512, 128>}, {transform_indices = @transform_5, window_bounds = array<i64: 2, 8, 128>}, {transform_indices = @transform_6, window_bounds = array<i64: 2, 128>}]} {
    %c0 = arith.constant 0 : index
    %c0_0 = arith.constant 0 : index
    %c0_1 = arith.constant 0 : index
    %0 = vector.load %arg1[%c0, %c0_0, %c0_1] : memref<2x8x128xf32, #tpu.memory_space<vmem>>, vector<2x8x128xf32>
    %c0_2 = arith.constant 0 : index
    %c0_3 = arith.constant 0 : index
    %1 = vector.load %arg2[%c0_2, %c0_3] : memref<2x128xf32, #tpu.memory_space<vmem>>, vector<2x128xf32>
    %c0_4 = arith.constant 0 : index
    %c0_5 = arith.constant 0 : index
    %2 = vector.load %arg3[%c0_4, %c0_5] : memref<2x128xf32, #tpu.memory_space<vmem>>, vector<2x128xf32>
    %3 = vector.extract_strided_slice %2 {offsets = [0, 0], sizes = [1, 128], strides = [1, 1]} : vector<2x128xf32> to vector<1x128xf32>
    %4 = vector.extract_strided_slice %2 {offsets = [1, 0], sizes = [1, 128], strides = [1, 1]} : vector<2x128xf32> to vector<1x128xf32>
    %cst = arith.constant dense<0.000000e+00> : vector<2x8xf32>
    %5 = vector.multi_reduction <add>, %0, %cst [2] : vector<2x8x128xf32> to vector<2x8xf32>
    %6 = vector.shape_cast %5 : vector<2x8xf32> to vector<2x8x1xf32>
    %cst_6 = arith.constant 1.280000e+02 : f32
    %7 = vector.broadcast %cst_6 : f32 to vector<2x8x1xf32>
    %8 = arith.divf %6, %7 : vector<2x8x1xf32>
    %9 = vector.broadcast %8 : vector<2x8x1xf32> to vector<2x8x128xf32>
    %10 = arith.subf %0, %9 : vector<2x8x128xf32>
    %11 = arith.mulf %10, %10 : vector<2x8x128xf32>
    %cst_7 = arith.constant dense<0.000000e+00> : vector<2x8xf32>
    %12 = vector.multi_reduction <add>, %11, %cst_7 [2] : vector<2x8x128xf32> to vector<2x8xf32>
    %13 = vector.shape_cast %12 : vector<2x8xf32> to vector<2x8x1xf32>
    %cst_8 = arith.constant 1.280000e+02 : f32
    %14 = vector.broadcast %cst_8 : f32 to vector<2x8x1xf32>
    %15 = arith.divf %13, %14 : vector<2x8x1xf32>
    %cst_9 = arith.constant 9.99999974E-6 : f32
    %16 = vector.broadcast %cst_9 : f32 to vector<2x8x1xf32>
    %17 = arith.addf %15, %16 : vector<2x8x1xf32>
    %18 = math.rsqrt %17 : vector<2x8x1xf32>
    %19 = vector.broadcast %18 : vector<2x8x1xf32> to vector<2x8x128xf32>
    %20 = arith.mulf %10, %19 : vector<2x8x128xf32>
    %21 = vector.shape_cast %3 : vector<1x128xf32> to vector<1x1x128xf32>
    %22 = vector.broadcast %21 : vector<1x1x128xf32> to vector<2x8x128xf32>
    %23 = arith.mulf %20, %22 : vector<2x8x128xf32>
    %24 = vector.shape_cast %4 : vector<1x128xf32> to vector<1x1x128xf32>
    %25 = vector.broadcast %24 : vector<1x1x128xf32> to vector<2x8x128xf32>
    %26 = arith.addf %23, %25 : vector<2x8x128xf32>
    %27 = vector.extract_strided_slice %26 {offsets = [0, 7, 0], sizes = [2, 1, 128], strides = [1, 1, 1]} : vector<2x8x128xf32> to vector<2x1x128xf32>
    %28 = vector.shape_cast %27 : vector<2x1x128xf32> to vector<2x128xf32>
    %c0_10 = arith.constant 0 : index
    %c0_11 = arith.constant 0 : index
    %29 = vector.load %arg7[%c0_10, %c0_11] : memref<2x128xf32, #tpu.memory_space<vmem>>, vector<2x128xf32>
    tpu.vector_store %arg7[%c0_10, %c0_11], %28 {strides = array<i32>} : memref<2x128xf32, #tpu.memory_space<vmem>>, vector<2x128xf32>,
    %30 = vector.shape_cast %26 : vector<2x8x128xf32> to vector<16x128xf32>
    %c1_i32 = arith.constant 1 : i32
    %31 = tpu.dynamic_rotate %30 by %c1_i32 dim 0 : vector<16x128xf32>, i32 -> vector<16x128xf32>
    %32 = vector.shape_cast %31 : vector<16x128xf32> to vector<2x8x128xf32>
    %33 = tpu.iota {dimensions = array<i32: 1>} : vector<1x8x1xi32>
    %c0_i32 = arith.constant 0 : i32
    %34 = vector.broadcast %c0_i32 : i32 to vector<1x8x1xi32>
    %35 = arith.cmpi eq, %33, %34 : vector<1x8x1xi32>
    %36 = vector.shape_cast %1 : vector<2x128xf32> to vector<2x1x128xf32>
    %37 = vector.shape_cast %35 : vector<1x8x1xi1> to vector<1x8x1xi1>
    %38 = vector.broadcast %37 : vector<1x8x1xi1> to vector<2x8x128xi1>
    %39 = vector.shape_cast %36 : vector<2x1x128xf32> to vector<2x1x128xf32>
    %40 = vector.broadcast %39 : vector<2x1x128xf32> to vector<2x8x128xf32>
    %41 = arith.select %38, %40, %32 : vector<2x8x128xi1>, vector<2x8x128xf32>
    %42 = arith.subf %26, %41 : vector<2x8x128xf32>
    %43 = tpu.concatenate %41, %42 in 2 : vector<2x8x128xf32>, vector<2x8x128xf32> -> vector<2x8x256xf32>
    %44 = vector.shape_cast %43 : vector<2x8x256xf32> to vector<16x256xf32>
    %45 = arith.truncf %44 : vector<16x256xf32> to vector<16x256xbf16>
    %c0_12 = arith.constant 0 : index
    %c0_13 = arith.constant 0 : index
    %46 = vector.load %arg4[%c0_12, %c0_13] : memref<256x640xbf16, #tpu.memory_space<vmem>>, vector<256x640xbf16>
    %cst_14 = arith.constant dense<0.000000e+00> : vector<16x640xf32>
    %47 = tpu.matmul %45, %46, %cst_14 {dimension_numbers = #tpu.dot_dimension_numbers<[1], [0], [0], [1], [0, 0, 1, 1], [], []>} : vector<16x256xbf16>, vector<256x640xbf16>, vector<16x640xf32> -> vector<16x640xf32>
    %48 = vector.extract_strided_slice %47 {offsets = [0, 0], sizes = [16, 512], strides = [1, 1]} : vector<16x640xf32> to vector<16x512xf32>
    %cst_15 = arith.constant 0.000000e+00 : f32
    %49 = vector.broadcast %cst_15 : f32 to vector<16x512xf32>
    %50 = arith.maximumf %48, %49 : vector<16x512xf32>
    %51 = arith.mulf %50, %50 : vector<16x512xf32>
    %52 = arith.truncf %51 : vector<16x512xf32> to vector<16x512xbf16>
    %53 = vector.extract_strided_slice %47 {offsets = [0, 512], sizes = [16, 128], strides = [1, 1]} : vector<16x640xf32> to vector<16x128xf32>
    %c0_16 = arith.constant 0 : index
    %c0_17 = arith.constant 0 : index
    %54 = vector.load %arg5[%c0_16, %c0_17] : memref<512x128xbf16, #tpu.memory_space<vmem>>, vector<512x128xbf16>
    %cst_18 = arith.constant dense<0.000000e+00> : vector<16x128xf32>
    %55 = tpu.matmul %52, %54, %cst_18 {dimension_numbers = #tpu.dot_dimension_numbers<[1], [0], [0], [1], [0, 0, 1, 1], [], []>} : vector<16x512xbf16>, vector<512x128xbf16>, vector<16x128xf32> -> vector<16x128xf32>
    %56 = arith.negf %53 : vector<16x128xf32>
    %57 = math.exp %56 : vector<16x128xf32>
    %cst_19 = arith.constant 1.000000e+00 : f32
    %58 = vector.broadcast %cst_19 : f32 to vector<16x128xf32>
    %59 = arith.addf %58, %57 : vector<16x128xf32>
    %60 = arith.divf %58, %59 : vector<16x128xf32>
    %61 = arith.mulf %55, %60 : vector<16x128xf32>
    %62 = vector.shape_cast %61 : vector<16x128xf32> to vector<2x8x128xf32>
    %63 = arith.addf %0, %62 : vector<2x8x128xf32>
    %c0_20 = arith.constant 0 : index
    %c0_21 = arith.constant 0 : index
    %c0_22 = arith.constant 0 : index
    %64 = vector.load %arg6[%c0_20, %c0_21, %c0_22] : memref<2x8x128xf32, #tpu.memory_space<vmem>>, vector<2x8x128xf32>
    tpu.vector_store %arg6[%c0_20, %c0_21, %c0_22], %63 {strides = array<i32>} : memref<2x8x128xf32, #tpu.memory_space<vmem>>, vector<2x8x128xf32>,
    return
  }
  func.func @transform_0(%arg0: i32) -> (i32, i32, i32) {
    %c0_i32 = arith.constant 0 : i32
    %c0_i32_0 = arith.constant 0 : i32
    %c0_i32_1 = arith.constant 0 : i32
    return %arg0, %c0_i32, %c0_i32_0 : i32, i32, i32
  }
  func.func @transform_1(%arg0: i32) -> (i32, i32) {
    %c0_i32 = arith.constant 0 : i32
    %c0_i32_0 = arith.constant 0 : i32
    return %arg0, %c0_i32 : i32, i32
  }
  func.func @transform_2(%arg0: i32) -> (i32, i32) {
    %c0_i32 = arith.constant 0 : i32
    %c0_i32_0 = arith.constant 0 : i32
    %c0_i32_1 = arith.constant 0 : i32
    return %c0_i32, %c0_i32_0 : i32, i32
  }
  func.func @transform_3(%arg0: i32) -> (i32, i32) {
    %c0_i32 = arith.constant 0 : i32
    %c0_i32_0 = arith.constant 0 : i32
    %c0_i32_1 = arith.constant 0 : i32
    return %c0_i32, %c0_i32_0 : i32, i32
  }
  func.func @transform_4(%arg0: i32) -> (i32, i32) {
    %c0_i32 = arith.constant 0 : i32
    %c0_i32_0 = arith.constant 0 : i32
    %c0_i32_1 = arith.constant 0 : i32
    return %c0_i32, %c0_i32_0 : i32, i32
  }
  func.func @transform_5(%arg0: i32) -> (i32, i32, i32) {
    %c0_i32 = arith.constant 0 : i32
    %c0_i32_0 = arith.constant 0 : i32
    %c0_i32_1 = arith.constant 0 : i32
    return %arg0, %c0_i32, %c0_i32_0 : i32, i32, i32
  }
  func.func @transform_6(%arg0: i32) -> (i32, i32) {
    %c0_i32 = arith.constant 0 : i32
    %c0_i32_0 = arith.constant 0 : i32
    return %arg0, %c0_i32 : i32, i32
  }
}

</mosaic_0001>

<bundles_post_ra>
// kernel: _channel_mixer_call.1
= control target key start
LH: loop header
LB: loop body
LE: loop exit
PB: predicated region body
PF: predicated region fallthrough
CT: control target
= control target key end

     0   :  { %12 = vsyncpa [#allocation3], 0  ;;  %s1814_s0 = inlined_call_operand.hbm [shape: f32[2,8,128], index: 0, kind: input, shape index: {}]   ;;  %s1815_s1 = inlined_call_operand.vmem [shape: f32[2,128], index: 1, kind: input, shape index: {}]   ;;  %s1816_s2 = inlined_call_operand.vmem [shape: f32[2,128], index: 2, kind: input, shape index: {}]   ;;  %s1817_s3 = inlined_call_operand.hbm [shape: bf16[256,640], index: 3, kind: input, shape index: {}]   ;;  %s1818_s4 = inlined_call_operand.hbm [shape: bf16[512,128], index: 4, kind: input, shape index: {}]   ;;  %s1819_s5 = inlined_call_operand.hbm [shape: f32[2,8,128], index: 5, kind: output, shape index: {0}]   ;;  %s1820_s6 = inlined_call_operand.hbm [shape: f32[2,128], index: 6, kind: output, shape index: {1}]  }
   0x1   :  { %13 = vsyncpa [#allocation6], 0 }
   0x2   :  { %14 = vsyncpa [#allocation4], 0 }
   0x3   :  { %15 = vsyncpa [#allocation10], 0  ;;  %s1677_s21 = smov [#allocation5]   ;;  %s1559_s25 = scalar_lea.hbm %s1817_s3, 10240 }
   0x4   :  { %s37_s22 = sshll.u32 %s1677_s21, 4  ;;  %p1560_p0 = scmp.ne.s32.totalorder %s1817_s3, %s1559_s25  ;;  %s38_s22 = int_to_ptr.vmem [resolvable:$true] %s37_s22 }
   0x5   :  { %p1563_p1 = scmp.lt.u32.totalorder %s1559_s25, %s1817_s3 }
   0x7   :  { %p1565_p2 = pnand %p1563_p1, %p1560_p0 }
   0x9   :  { %1568 = shalt.err (!%p1565_p2)
}
   0xa   :  { %s1569_s30 = scalar_lea.vmem %s38_s22, 10240  ;;  %p1574_p4 = scmp.lt.s32.totalorder %s38_s22, %s38_s22 }
   0xb   :  { %p1570_p3 = scmp.ne.s32.totalorder %s38_s22, %s1569_s30  ;;  %p1575_p5 = scmp.lt.s32.totalorder %s1569_s30, %s1569_s30 }
   0xd   :  { %p1576_p6 = por %p1575_p5, %p1574_p4 }
   0xf   :  { %p1577_p7 = pnand %p1576_p6, %p1570_p3 }
  0x11   :  { %1580 = shalt.err (!%p1577_p7)
}
  0x12   :  { %s1678_s7 = smov 320   ;;  %s1679_s8 = smov 20  }
  0x13   :  { %43 = dma.hbm_to_vmem [thread:$0]  %s1817_s3, 10240, %s38_s22, [#allocation6], %s1678_s7, %s1678_s7, %s1679_s8  }
  0x14   :  { %s1680_s11 = smov [#allocation2]   ;;  %s1581_s15 = scalar_lea.hbm %s1814_s0, 256 }
  0x15   :  { %s21_s12 = sshll.u32 %s1680_s11, 4  ;;  %p1582_p8 = scmp.ne.s32.totalorder %s1814_s0, %s1581_s15  ;;  %s22_s12 = int_to_ptr.vmem [resolvable:$true] %s21_s12 }
  0x16   :  { %p1585_p9 = scmp.lt.u32.totalorder %s1581_s15, %s1814_s0 }
  0x18   :  { %p1587_p10 = pnand %p1585_p9, %p1582_p8 }
  0x1a   :  { %1590 = shalt.err (!%p1587_p10)
}
  0x1b   :  { %s1591_s20 = scalar_lea.vmem %s22_s12, 256  ;;  %p1596_p12 = scmp.lt.s32.totalorder %s22_s12, %s22_s12 }
  0x1c   :  { %p1592_p11 = scmp.ne.s32.totalorder %s22_s12, %s1591_s20  ;;  %p1597_p13 = scmp.lt.s32.totalorder %s1591_s20, %s1591_s20 }
  0x1e   :  { %p1598_p0 = por %p1597_p13, %p1596_p12 }
  0x20   :  { %p1599_p1 = pnand %p1598_p0, %p1592_p11 }
  0x22   :  { %1602 = shalt.err (!%p1599_p1)
}
  0x23   :  { %s1681_s3 = smov 128   ;;  %s1682_s21 = smov 8  }
  0x24   :  { %27 = dma.hbm_to_vmem [thread:$0]  %s1814_s0, 256, %s22_s12, [#allocation3], %s1681_s3, %s1681_s3, %s1682_s21  }
  0x25   :  { %s1683_s24 = smov [#allocation7]   ;;  %s1603_s28 = scalar_lea.hbm %s1818_s4, 4096 }
  0x26   :  { %s49_s25 = sshll.u32 %s1683_s24, 4  ;;  %p1604_p2 = scmp.ne.s32.totalorder %s1818_s4, %s1603_s28  ;;  %s50_s25 = int_to_ptr.vmem [resolvable:$true] %s49_s25 }
  0x27   :  { %p1607_p3 = scmp.lt.u32.totalorder %s1603_s28, %s1818_s4 }
  0x29   :  { %p1609_p4 = pnand %p1607_p3, %p1604_p2 }
  0x2b   :  { %1612 = shalt.err (!%p1609_p4)
}
  0x2c   :  { %s1613_s9 = scalar_lea.vmem %s50_s25, 4096  ;;  %p1618_p6 = scmp.lt.s32.totalorder %s50_s25, %s50_s25 }
  0x2d   :  { %p1614_p5 = scmp.ne.s32.totalorder %s50_s25, %s1613_s9  ;;  %p1619_p7 = scmp.lt.s32.totalorder %s1613_s9, %s1613_s9 }
  0x2f   :  { %p1620_p8 = por %p1619_p7, %p1618_p6 }
  0x31   :  { %p1621_p9 = pnand %p1620_p8, %p1614_p5 }
  0x33   :  { %1624 = shalt.err (!%p1621_p9)
}
  0x34   :  { %s1684_s0 = smov 64   ;;  %s1685_s10 = smov 4  }
  0x35   :  { %55 = dma.hbm_to_vmem [thread:$0]  %s1818_s4, 4096, %s50_s25, [#allocation6], %s1684_s0, %s1684_s0, %s1685_s10  }
  0x36   :  { %1669 = dma.done.wait [#allocation3], 256  }
  0x37   :  { %1670 = vsyncadd [#allocation3], 4294967040 }
  0x38   :  { %1671 = dma.done.wait [#allocation6], 14336  }
  0x39   :  { %1672 = vsyncadd [#allocation6], 4294952960  ;;  %v1763_v0 = vld [vmem:[#allocation2] sm:$0xff]  ;;  %v1765_v1 = vld [vmem:[#allocation2 + $0x8] sm:$0xff] }
  0x3a   :  { %70 = vadd.xlane.f32.xlu0 %v1763_v0  ;;  %v1401_v2 = vld [vmem:[#allocation5 + $0x4] ss:$20 sps:$4 sm:$0xff]   ;;  %v1403_v3 = vld [vmem:[#allocation5] ss:$20 sps:$4 sm:$0xff]   ;;  %v1406_v5 = vld [vmem:[#allocation5 + $0x8] ss:$20 sps:$4 sm:$0xff]  }
  0x3b   :  { %v1404_v4 = vld [vmem:[#allocation5 + $0xc] ss:$20 sps:$4 sm:$0xff]   ;;  %673 = vmatprep.subr.bf16.mxu0 %v1401_v2  ;;  %v1410_v7 = vld [vmem:[#allocation5 + $0x34] ss:$20 sps:$4 sm:$0xff]   ;;  %v1412_v9 = vld [vmem:[#allocation5 + $0x30] ss:$20 sps:$4 sm:$0xff]  }
  0x3c   :  { %v1407_v6 = vld [vmem:[#allocation5 + $0x2c] ss:$20 sps:$4 sm:$0xff]   ;;  %716 = vmatprep.subr.bf16.mxu1 %v1404_v4  ;;  %674 = vmatpush1.bf16.msra.mxu0 %v1403_v3  ;;  %v1409_v8 = vld [vmem:[#allocation5 + $0x28] ss:$20 sps:$4 sm:$0xff]   ;;  %v1415_v12 = vld [vmem:[#allocation5 + $0x50] ss:$20 sps:$4 sm:$0xff]  }
  0x3d   :  { %717 = vmatpush1.bf16.msra.mxu1 %v1406_v5  ;;  %675 = vmatprep.subr.bf16.mxu0 %v1407_v6  ;;  %v1413_v10 = vld [vmem:[#allocation5 + $0x54] ss:$20 sps:$4 sm:$0xff]   ;;  %v1416_v11 = vld [vmem:[#allocation5 + $0x5c] ss:$20 sps:$4 sm:$0xff]   ;;  %v1418_v13 = vld [vmem:[#allocation5 + $0x58] ss:$20 sps:$4 sm:$0xff]  }
  0x3e   :  { %72 = vadd.xlane.f32.xlu0 %v1765_v1  ;;  %718 = vmatprep.subr.bf16.mxu1 %v1410_v7  ;;  %v1419_v14 = vld [vmem:[#allocation5 + $0x7c] ss:$20 sps:$4 sm:$0xff]   ;;  %v1422_v15 = vld [vmem:[#allocation5 + $0x84] ss:$20 sps:$4 sm:$0xff]   ;;  %v1424_v17 = vld [vmem:[#allocation5 + $0x80] ss:$20 sps:$4 sm:$0xff]  }
  0x3f   :  { %v1421_v16 = vld [vmem:[#allocation5 + $0x78] ss:$20 sps:$4 sm:$0xff]   ;;  %v1427_v20 = vld [vmem:[#allocation5 + $0xa0] ss:$20 sps:$4 sm:$0xff]   ;;  %v1430_v21 = vld [vmem:[#allocation5 + $0xa8] ss:$20 sps:$4 sm:$0xff]  }
  0x40   :  { %676 = vmatpush1.bf16.msra.mxu0 %v1409_v8  ;;  %v1425_v18 = vld [vmem:[#allocation5 + $0xa4] ss:$20 sps:$4 sm:$0xff]   ;;  %v1428_v19 = vld [vmem:[#allocation5 + $0xac] ss:$20 sps:$4 sm:$0xff]   ;;  %v1434_v23 = vld [vmem:[#allocation5 + $0xd4] ss:$20 sps:$4 sm:$0xff]  }
  0x41   :  { %719 = vmatpush1.bf16.msra.mxu1 %v1412_v9  ;;  %677 = vmatprep.subr.bf16.mxu0 %v1413_v10  ;;  %v1431_v22 = vld [vmem:[#allocation5 + $0xcc] ss:$20 sps:$4 sm:$0xff]   ;;  %v1433_v24 = vld [vmem:[#allocation5 + $0xc8] ss:$20 sps:$4 sm:$0xff]   ;;  %v1436_v25 = vld [vmem:[#allocation5 + $0xd0] ss:$20 sps:$4 sm:$0xff]  }
  0x42   :  { %720 = vmatprep.subr.bf16.mxu1 %v1416_v11  ;;  %v1437_v26 = vld [vmem:[#allocation5 + $0xf4] ss:$20 sps:$4 sm:$0xff]   ;;  %v1440_v27 = vld [vmem:[#allocation5 + $0xfc] ss:$20 sps:$4 sm:$0xff]   ;;  %v1442_v29 = vld [vmem:[#allocation5 + $0xf8] ss:$20 sps:$4 sm:$0xff]  }
  0x43   :  { %v1439_v28 = vld [vmem:[#allocation5 + $0xf0] ss:$20 sps:$4 sm:$0xff]   ;;  %v1445_v32 = vld [vmem:[#allocation5 + $0x118] ss:$20 sps:$4 sm:$0xff]   ;;  %v1448_v33 = vld [vmem:[#allocation5 + $0x120] ss:$20 sps:$4 sm:$0xff]  }
  0x44   :  { %678 = vmatpush1.bf16.msra.mxu0 %v1415_v12  ;;  %v1443_v30 = vld [vmem:[#allocation5 + $0x11c] ss:$20 sps:$4 sm:$0xff]   ;;  %v1446_v31 = vld [vmem:[#allocation5 + $0x124] ss:$20 sps:$4 sm:$0xff]   ;;  %v1451_v43 = vld [vmem:[#allocation5 + $0x140] ss:$20 sps:$4 sm:$0xff]  }
  0x45   :  { %721 = vmatpush1.bf16.msra.mxu1 %v1418_v13  ;;  %679 = vmatprep.subr.bf16.mxu0 %v1419_v14  ;;  %v1449_v42 = vld [vmem:[#allocation5 + $0x144] ss:$20 sps:$4 sm:$0xff]   ;;  %v1452_v44 = vld [vmem:[#allocation5 + $0x14c] ss:$20 sps:$4 sm:$0xff]   ;;  %v1454_v45 = vld [vmem:[#allocation5 + $0x148] ss:$20 sps:$4 sm:$0xff]   ;;  %v93_v14 = vlaneseq }
  0x46   :  { %722 = vmatprep.subr.bf16.mxu1 %v1422_v15  ;;  %v1455_v46 = vld [vmem:[#allocation5 + $0x16c] ss:$20 sps:$4 sm:$0xff]   ;;  %v1457_v47 = vld [vmem:[#allocation5 + $0x168] ss:$20 sps:$4 sm:$0xff]   ;;  %v1460_v49 = vld [vmem:[#allocation5 + $0x170] ss:$20 sps:$4 sm:$0xff]  }
  0x47   :  { %v1458_v48 = vld [vmem:[#allocation5 + $0x174] ss:$20 sps:$4 sm:$0xff]   ;;  %v1463_v51 = vld [vmem:[#allocation5 + $0x190] ss:$20 sps:$4 sm:$0xff]   ;;  %v1466_v53 = vld [vmem:[#allocation5 + $0x198] ss:$20 sps:$4 sm:$0xff]  }
  0x48   :  { %680 = vmatpush1.bf16.msra.mxu0 %v1421_v16  ;;  %v1461_v50 = vld [vmem:[#allocation5 + $0x194] ss:$20 sps:$4 sm:$0xff]   ;;  %v1464_v52 = vld [vmem:[#allocation5 + $0x19c] ss:$20 sps:$4 sm:$0xff]   ;;  %v1469_v55 = vld [vmem:[#allocation5 + $0x1b8] ss:$20 sps:$4 sm:$0xff]  }
  0x49   :  { %723 = vmatpush1.bf16.msra.mxu1 %v1424_v17  ;;  %681 = vmatprep.subr.bf16.mxu0 %v1425_v18  ;;  %v1467_v54 = vld [vmem:[#allocation5 + $0x1bc] ss:$20 sps:$4 sm:$0xff]   ;;  %v1470_v56 = vld [vmem:[#allocation5 + $0x1c4] ss:$20 sps:$4 sm:$0xff]   ;;  %v1472_v57 = vld [vmem:[#allocation5 + $0x1c0] ss:$20 sps:$4 sm:$0xff]  }
  0x4a   :  { %724 = vmatprep.subr.bf16.mxu1 %v1428_v19  ;;  %v1473_v58 = vld [vmem:[#allocation5 + $0x1e4] ss:$20 sps:$4 sm:$0xff]   ;;  %v1475_v59 = vld [vmem:[#allocation5 + $0x1e0] ss:$20 sps:$4 sm:$0xff]   ;;  %v1478_v61 = vld [vmem:[#allocation5 + $0x1e8] ss:$20 sps:$4 sm:$0xff]  }
  0x4b   :  { %v1476_v60 = vld [vmem:[#allocation5 + $0x1ec] ss:$20 sps:$4 sm:$0xff]   ;;  %v1481_v63 = vld [vmem:[#allocation5 + $0x208] ss:$20 sps:$4 sm:$0xff]   ;;  %v1487_v4 = vld [vmem:[#allocation5 + $0x230] ss:$20 sps:$4 sm:$0xff]  }
  0x4c   :  { %682 = vmatpush1.bf16.msra.mxu0 %v1427_v20  ;;  %v1479_v62 = vld [vmem:[#allocation5 + $0x20c] ss:$20 sps:$4 sm:$0xff]   ;;  %v1485_v2 = vld [vmem:[#allocation5 + $0x234] ss:$20 sps:$4 sm:$0xff]   ;;  %v1488_v3 = vld [vmem:[#allocation5 + $0x23c] ss:$20 sps:$4 sm:$0xff]  }
  0x4d   :  { %725 = vmatpush1.bf16.msra.mxu1 %v1430_v21  ;;  %683 = vmatprep.subr.bf16.mxu0 %v1431_v22  ;;  %v1490_v5 = vld [vmem:[#allocation5 + $0x238] ss:$20 sps:$4 sm:$0xff]   ;;  %v1491_v6 = vld [vmem:[#allocation5 + $0x25c] ss:$20 sps:$4 sm:$0xff]   ;;  %v1496_v9 = vld [vmem:[#allocation5 + $0x260] ss:$20 sps:$4 sm:$0xff]  }
  0x4e   :  { %726 = vmatprep.subr.bf16.mxu1 %v1434_v23  ;;  %v1494_v7 = vld [vmem:[#allocation5 + $0x264] ss:$20 sps:$4 sm:$0xff]   ;;  %v94_v18 = vshrl.u32 %v93_v14, 7  ;;  %v1686_v20 = vmov 1966171168  }
  0x4f   :  { %v1493_v8 = vld [vmem:[#allocation5 + $0x258] ss:$20 sps:$4 sm:$0xff]   ;;  %v1497_v10 = vld [vmem:[#allocation5 + $0x150] ss:$20 sps:$4 sm:$0xff]   ;;  %v130_v21 = vunpack.c.l.s4 %v1686_v20 }
  0x50   :  { %684 = vmatpush1.bf16.msra.mxu0 %v1433_v24  ;;  %v1513_v11 = vld [vmem:[#allocation7 + $0x40] sm:$0xff]   ;;  %v95_v22 = vsub.s32 0, %v94_v18  ;;  %v69_v23 = vld [vmem:[%s1816_s2] sm:$0x3]  ;;  %v101_v24 = vsub.s32 1, %v94_v18  ;;  %vm116_vm0 = vcmp.lt.s32.totalorder %v94_v18, 1 }
  0x51   :  { %727 = vmatpush1.bf16.msra.mxu1 %v1436_v25  ;;  %685 = vmatprep.subr.bf16.mxu0 %v1437_v26  ;;  %v131_v25 = vunpack.c.0.s8 %v130_v21  ;;  %v1208_v26 = vld.sshfl [vmem:[%s1815_s1] sm:$0x11 pattern:$0x75316420]  ;;  %vm119_vm1 = vcmp.eq.s32.totalorder %v94_v18, 0  ;;  %v1514_v14 = vld [vmem:[#allocation7 + $0xc0] sm:$0xff]  }
  0x52   :  { %728 = vmatprep.subr.bf16.mxu1 %v1440_v27  ;;  %v96_v27 = vrot.slane %v69_v23, %v95_v22  ;;  %v1526_v20 = vld [vmem:[#allocation7 + $0xd8] sm:$0xff]   ;;  %s1687_s1 = smov [#allocation9]  }
  0x53   :  { %v1528_v21 = vld [vmem:[#allocation7 + $0x98] sm:$0xff]   ;;  %s1194_s2 = sshll.u32 %s1687_s1, 4  ;;  %s1195_s2 = int_to_ptr.vmem [resolvable:$true] %s1194_s2 }
  0x54   :  { %686 = vmatpush1.bf16.msra.mxu0 %v1439_v28  ;;  %s1625_s16 = scalar_lea.vmem %s1195_s2, 32  ;;  %p1630_p11 = scmp.lt.s32.totalorder %s1195_s2, %s1195_s2 }
  0x55   :  { %729 = vmatpush1.bf16.msra.mxu1 %v1442_v29  ;;  %687 = vmatprep.subr.bf16.mxu0 %v1443_v30  ;;  %v102_v30 = vrot.slane %v69_v23, %v101_v24  ;;  %v1532_v23 = vld [vmem:[#allocation7 + $0xa0] sm:$0xff]   ;;  %v1534_v24 = vld [vmem:[#allocation7 + $0xe8] sm:$0xff]   ;;  %p1626_p10 = scmp.ne.s32.totalorder %s1195_s2, %s1625_s16  ;;  %p1631_p12 = scmp.lt.s32.totalorder %s1625_s16, %s1625_s16 }
  0x56   :  { %730 = vmatprep.subr.bf16.mxu1 %v1446_v31  ;;  %v128_v31 = vcombine.high %v1208_v26, %v1208_v26 }
  0x57   :  { %p1632_p13 = por %p1631_p12, %p1630_p11 }
  0x58   :  { %688 = vmatpush1.bf16.msra.mxu0 %v1445_v32  ;;  %v134_v32 = vsub.s32 %v131_v25, %v94_v18  ;;  %v1522_v18 = vld [vmem:[#allocation7 + $0xd0] sm:$0xff]   ;;  %v1535_v25 = vld [vmem:[#allocation7 + $0x28] sm:$0xff]  }
  0x59   :  { %731 = vmatpush1.bf16.msra.mxu1 %v1448_v33  ;;  %689 = vmatprep.subr.bf16.mxu0 %v1449_v42  ;;  %p1633_p0 = pnand %p1632_p13, %p1626_p10 }
  0x5a   :  { %732 = vmatprep.subr.bf16.mxu1 %v1452_v44 }
  0x5c   :  { %690 = vmatpush1.bf16.msra.mxu0 %v1451_v43 }
  0x5d   :  { %733 = vmatpush1.bf16.msra.mxu1 %v1454_v45  ;;  %691 = vmatprep.subr.bf16.mxu0 %v1455_v46 }
  0x5e   :  { %734 = vmatprep.subr.bf16.mxu1 %v1458_v48 }
  0x60   :  { %692 = vmatpush1.bf16.msra.mxu0 %v1457_v47 }
  0x61   :  { %735 = vmatpush1.bf16.msra.mxu1 %v1460_v49  ;;  %693 = vmatprep.subr.bf16.mxu0 %v1461_v50 }
  0x62   :  { %736 = vmatprep.subr.bf16.mxu1 %v1464_v52  ;;  %v1498_v52 = vld [vmem:[#allocation5 + $0x10] ss:$20 sps:$4 sm:$0xff]  }
  0x64   :  { %694 = vmatpush1.bf16.msra.mxu0 %v1463_v51 }
  0x65   :  { %737 = vmatpush1.bf16.msra.mxu1 %v1466_v53  ;;  %695 = vmatprep.subr.bf16.mxu0 %v1467_v54  ;;  %v1499_v54 = vld [vmem:[#allocation5 + $0x178] ss:$20 sps:$4 sm:$0xff]  }
  0x66   :  { %738 = vmatprep.subr.bf16.mxu1 %v1470_v56  ;;  %v1517_v56 = vld [vmem:[#allocation7 + $0x48] sm:$0xff]  }
  0x68   :  { %696 = vmatpush1.bf16.msra.mxu0 %v1469_v55  ;;  %v1515_v55 = vld [vmem:[#allocation7] sm:$0xff]  }
  0x69   :  { %739 = vmatpush1.bf16.msra.mxu1 %v1472_v57  ;;  %697 = vmatprep.subr.bf16.mxu0 %v1473_v58  ;;  %v1500_v57 = vld [vmem:[#allocation5 + $0x38] ss:$20 sps:$4 sm:$0xff]   ;;  %v1501_v58 = vld [vmem:[#allocation5 + $0x1a0] ss:$20 sps:$4 sm:$0xff]  }
  0x6a   :  { %740 = vmatprep.subr.bf16.mxu1 %v1476_v60  ;;  %v1521_v60 = vld [vmem:[#allocation7 + $0x50] sm:$0xff]  }
  0x6c   :  { %698 = vmatpush1.bf16.msra.mxu0 %v1475_v59  ;;  %v1519_v59 = vld [vmem:[#allocation7 + $0x8] sm:$0xff]  }
  0x6d   :  { %741 = vmatpush1.bf16.msra.mxu1 %v1478_v61  ;;  %699 = vmatprep.subr.bf16.mxu0 %v1479_v62  ;;  %v1502_v61 = vld [vmem:[#allocation5 + $0x60] ss:$20 sps:$4 sm:$0xff]   ;;  %v1503_v62 = vld [vmem:[#allocation5 + $0x1c8] ss:$20 sps:$4 sm:$0xff]  }
  0x70   :  { %700 = vmatpush1.bf16.msra.mxu0 %v1481_v63  ;;  %v1523_v63 = vld [vmem:[#allocation7 + $0x10] sm:$0xff]  }
  0x71   :  { %701 = vmatprep.subr.bf16.mxu0 %v1485_v2  ;;  %v1505_v2 = vld [vmem:[#allocation5 + $0x1f0] ss:$20 sps:$4 sm:$0xff]  }
  0x74   :  { %702 = vmatpush1.bf16.msra.mxu0 %v1487_v4  ;;  %v1529_v4 = vld [vmem:[#allocation7 + $0x60] sm:$0xff]  }
  0x75   :  { %703 = vmatprep.subr.bf16.mxu0 %v1491_v6  ;;  %v1507_v6 = vld [vmem:[#allocation5 + $0x218] ss:$20 sps:$4 sm:$0xff]  }
  0x78   :  { %704 = vmatpush1.bf16.msra.mxu0 %v1493_v8  ;;  %v1533_v8 = vld [vmem:[#allocation7 + $0x68] sm:$0xff]  }
  0x79   :  { %1323 = vmatprep.subr.bf16.mxu0 %v1497_v10  ;;  %v1509_v10 = vld [vmem:[#allocation5 + $0x240] ss:$20 sps:$4 sm:$0xff]  }
  0xc7   :  { %v71_v34 = vpop.xlane.xlu0 %70 }
  0xc8   :  { %v75_v35 = vmul.f32 0.0078125, %v71_v34 }
  0xca   :  { %v1770_v36 = vsub.f32 %v1763_v0, %v75_v35  ;;  %v1482_v0 = vld [vmem:[#allocation5 + $0x214] ss:$20 sps:$4 sm:$0xff]  }
  0xcb   :  { %v73_v37 = vpop.xlane.xlu0 %72  ;;  %742 = vmatprep.subr.bf16.mxu1 %v1482_v0  ;;  %v1525_v0 = vld [vmem:[#allocation7 + $0x58] sm:$0xff]  }
  0xcc   :  { %v76_v38 = vmul.f32 0.0078125, %v73_v37  ;;  %v79_v39 = vmul.f32 %v1770_v36, %v1770_v36 }
  0xce   :  { %v1775_v40 = vsub.f32 %v1765_v1, %v76_v38  ;;  %81 = vadd.xlane.f32.xlu1 %v79_v39  ;;  %v1484_v1 = vld [vmem:[#allocation5 + $0x210] ss:$20 sps:$4 sm:$0xff]   ;;  %v135_v38 = vrot.slane %v1208_v26, %v134_v32  ;;  %v142_v39 = vrot.slane %v128_v31, %v134_v32  ;;  %v1536_v26 = vld [vmem:[#allocation7 + $0xa8] sm:$0xff]   ;;  %v1541_v31 = vld [vmem:[#allocation7 + $0x78] sm:$0xff]  }
  0xcf   :  { %743 = vmatpush1.bf16.msra.mxu1 %v1484_v1  ;;  %v1504_v1 = vld [vmem:[#allocation5 + $0x88] ss:$20 sps:$4 sm:$0xff]  }
  0xd0   :  { %v80_v41 = vmul.f32 %v1775_v40, %v1775_v40  ;;  %744 = vmatprep.subr.bf16.mxu1 %v1488_v3  ;;  %v148_v43 = vrot.slane %v135_v38, %v95_v22  ;;  %v152_v44 = vrot.slane %v142_v39, %v95_v22  ;;  %v1527_v3 = vld [vmem:[#allocation7 + $0x18] sm:$0xff]   ;;  %v1530_v22 = vld [vmem:[#allocation7 + $0xe0] sm:$0xff]  }
  0xd1   :  { %v1542_v32 = vld [vmem:[#allocation7 + $0xf8] sm:$0xff]  }
  0xd2   :  { %83 = vadd.xlane.f32.xlu1 %v80_v41 }
  0xd3   :  { %745 = vmatpush1.bf16.msra.mxu1 %v1490_v5  ;;  %v1506_v5 = vld [vmem:[#allocation5 + $0xb0] ss:$20 sps:$4 sm:$0xff]  }
  0xd4   :  { %746 = vmatprep.subr.bf16.mxu1 %v1494_v7  ;;  %v1531_v7 = vld [vmem:[#allocation7 + $0x20] sm:$0xff]  }
  0xd7   :  { %747 = vmatpush1.bf16.msra.mxu1 %v1496_v9  ;;  %v1508_v9 = vld [vmem:[#allocation5 + $0xd8] ss:$20 sps:$4 sm:$0xff]  }
  0xd8   :  { %1345 = vmatprep.subr.bf16.mxu1 %v1513_v11  ;;  %v1510_v11 = vld [vmem:[#allocation5 + $0x100] ss:$20 sps:$4 sm:$0xff]  }
 0x15b   :  { %v82_v12 = vpop.xlane.xlu1 %81 }
 0x15c   :  { %v85_v13 = vmul.f32 0.0078125, %v82_v12  ;;  %v1511_v12 = vld [vmem:[#allocation5 + $0x268] ss:$20 sps:$4 sm:$0xff]  }
 0x15e   :  { %v87_v15 = vadd.f32 1e-05, %v85_v13  ;;  %v1512_v13 = vld [vmem:[#allocation5 + $0x128] ss:$20 sps:$4 sm:$0xff]  }
 0x15f   :  { %v84_v16 = vpop.xlane.xlu1 %83 }
 0x160   :  { %1545 = vrsqrt.f32 %v87_v15  ;;  %v86_v17 = vmul.f32 0.0078125, %v84_v16  ;;  %v1516_v15 = vld [vmem:[#allocation7 + $0x80] sm:$0xff]   ;;  %v1518_v16 = vld [vmem:[#allocation7 + $0xc8] sm:$0xff]  }
 0x162   :  { %v88_v19 = vadd.f32 1e-05, %v86_v17  ;;  %v1520_v17 = vld [vmem:[#allocation7 + $0x88] sm:$0xff]  }
 0x164   :  { %1547 = vrsqrt.f32 %v88_v19  ;;  %v1524_v19 = vld [vmem:[#allocation7 + $0x90] sm:$0xff]  }
 0x16a   :  { %v1546_v28 = vpop.eup %1545 }
 0x16b   :  { %v91_v29 = vmul.f32 %v1546_v28, %v1770_v36  ;;  %v1538_v28 = vld [vmem:[#allocation7 + $0xf0] sm:$0xff]  }
 0x16d   :  { %v97_v33 = vmul.f32 %v96_v27, %v91_v29  ;;  %v1539_v29 = vld [vmem:[#allocation7 + $0x30] sm:$0xff]  }
 0x16e   :  { %v1548_v34 = vpop.eup %1547 }
 0x16f   :  { %v92_v35 = vmul.f32 %v1548_v34, %v1775_v40  ;;  %v103_v37 = vadd.f32 %v102_v30, %v97_v33  ;;  %v1543_v33 = vld [vmem:[#allocation7 + $0x38] sm:$0xff]  }
 0x170   :  { %v1544_v34 = vld [vmem:[#allocation7 + $0xb8] sm:$0xff]  }
 0x171   :  { %v98_v41 = vmul.f32 %v96_v27, %v92_v35  ;;  %110 = vst [vmem:[#allocation9 - $0x7] sm:$0x80] %v103_v37  ;;  %v112_v46 = vrot.slane %v103_v37, 7  ;;  %v1537_v27 = vld [vmem:[#allocation7 + $0x70] sm:$0xff]  }
 0x173   :  { %v104_v42 = vadd.f32 %v102_v30, %v98_v41  ;;  %v1540_v30 = vld [vmem:[#allocation7 + $0xb0] sm:$0xff]  }
 0x175   :  { %v107_v45 = vrot.slane %v104_v42, 7 }
 0x177   :  { %v117_v36 = vsel %vm116_vm0, %v112_v46, %v107_v45  ;;  %v118_v47 = vsel %vm116_vm0, %v107_v45, %v112_v46  ;;  %111 = vst [vmem:[#allocation9 + $0x1] sm:$0x1] %v107_v45 }
 0x178   :  { %v155_v48 = vsel %vm119_vm1, %v148_v43, %v118_v47  ;;  %v156_v49 = vsel %vm119_vm1, %v152_v44, %v117_v36 }
 0x179   :  { %v157_v50 = vsub.f32 %v103_v37, %v155_v48  ;;  %v158_v51 = vsub.f32 %v104_v42, %v156_v49  ;;  %v159_v53 = vpack.c.bf16 %v156_v49, %v155_v48 }
 0x17b   :  { %v160_v40 = vpack.c.bf16 %v158_v51, %v157_v50 }
 0x17d   :  { %705 = vmatprep.mubr.bf16.mxu0 %v160_v40  ;;  %748 = vmatprep.mubr.bf16.mxu1 %v160_v40 }
 0x17e   :  { %706 = vmatmul.mubr.bf16.vlgmr.msra.gmra.mrb[0].mxu0 %v159_v53  ;;  %749 = vmatmul.mubr.bf16.vlgmr.msra.gmra.mrb[0].mxu1 %v159_v53 }
 0x17f   :  { %1324 = vmatpush3.bf16.msra.mxu0 %v1498_v52  ;;  %791 = vmatprep.mubr.bf16.mxu0 %v160_v40 }
 0x180   :  { %1325 = vmatprep.subr.bf16.mxu0 %v1499_v54  ;;  %1346 = vmatpush3.bf16.msra.mxu1 %v1515_v55 }
 0x181   :  { %1347 = vmatprep.subr.bf16.mxu1 %v1517_v56 }
 0x183   :  { %1326 = vmatpush3.bf16.msra.mxu0 %v1500_v57 }
 0x184   :  { %1327 = vmatprep.subr.bf16.mxu0 %v1501_v58  ;;  %1348 = vmatpush3.bf16.msra.mxu1 %v1519_v59 }
 0x185   :  { %1349 = vmatprep.subr.bf16.mxu1 %v1521_v60 }
 0x187   :  { %1328 = vmatpush3.bf16.msra.mxu0 %v1502_v61 }
 0x188   :  { %1329 = vmatprep.subr.bf16.mxu0 %v1503_v62  ;;  %1350 = vmatpush3.bf16.msra.mxu1 %v1523_v63 }
 0x189   :  { %1351 = vmatprep.subr.bf16.mxu1 %v1525_v0 }
 0x18b   :  { %1330 = vmatpush3.bf16.msra.mxu0 %v1504_v1 }
 0x18c   :  { %1331 = vmatprep.subr.bf16.mxu0 %v1505_v2  ;;  %1352 = vmatpush3.bf16.msra.mxu1 %v1527_v3 }
 0x18d   :  { %1353 = vmatprep.subr.bf16.mxu1 %v1529_v4 }
 0x18f   :  { %1332 = vmatpush3.bf16.msra.mxu0 %v1506_v5 }
 0x190   :  { %1333 = vmatprep.subr.bf16.mxu0 %v1507_v6  ;;  %1354 = vmatpush3.bf16.msra.mxu1 %v1531_v7 }
 0x191   :  { %1355 = vmatprep.subr.bf16.mxu1 %v1533_v8 }
 0x193   :  { %1334 = vmatpush3.bf16.msra.mxu0 %v1508_v9 }
 0x194   :  { %1335 = vmatprep.subr.bf16.mxu0 %v1509_v10  ;;  %1356 = vmatpush3.bf16.msra.mxu1 %v1535_v25 }
 0x195   :  { %1357 = vmatprep.subr.bf16.mxu1 %v1537_v27 }
 0x197   :  { %1336 = vmatpush3.bf16.msra.mxu0 %v1510_v11 }
 0x198   :  { %1337 = vmatprep.subr.bf16.mxu0 %v1511_v12  ;;  %1358 = vmatpush3.bf16.msra.mxu1 %v1539_v29 }
 0x199   :  { %1359 = vmatprep.subr.bf16.mxu1 %v1541_v31 }
 0x19b   :  { %1338 = vmatpush3.bf16.msra.mxu0 %v1512_v13 }
 0x19c   :  { %1367 = vmatprep.subr.bf16.mxu0 %v1514_v14  ;;  %1360 = vmatpush3.bf16.msra.mxu1 %v1543_v33 }
 0x19e   :  { %792 = vmatmul.mubr.bf16.vlgmr.msra.gmra.mrb[4].mxu0 %v159_v53 }
 0x19f   :  { %1368 = vmatpush3.bf16.msra.mxu0 %v1516_v15 }
 0x1a0   :  { %1369 = vmatprep.subr.bf16.mxu0 %v1518_v16 }
 0x1a3   :  { %1370 = vmatpush3.bf16.msra.mxu0 %v1520_v17 }
 0x1a4   :  { %1371 = vmatprep.subr.bf16.mxu0 %v1522_v18 }
 0x1a7   :  { %1372 = vmatpush3.bf16.msra.mxu0 %v1524_v19 }
 0x1a8   :  { %1373 = vmatprep.subr.bf16.mxu0 %v1526_v20 }
 0x1ab   :  { %1374 = vmatpush3.bf16.msra.mxu0 %v1528_v21 }
 0x1ac   :  { %1375 = vmatprep.subr.bf16.mxu0 %v1530_v22 }
 0x1af   :  { %1376 = vmatpush3.bf16.msra.mxu0 %v1532_v23 }
 0x1b0   :  { %1377 = vmatprep.subr.bf16.mxu0 %v1534_v24 }
 0x1b3   :  { %1378 = vmatpush3.bf16.msra.mxu0 %v1536_v26 }
 0x1b4   :  { %1379 = vmatprep.subr.bf16.mxu0 %v1538_v28 }
 0x1b7   :  { %1380 = vmatpush3.bf16.msra.mxu0 %v1540_v30 }
 0x1b8   :  { %1381 = vmatprep.subr.bf16.mxu0 %v1542_v32 }
 0x1bb   :  { %1382 = vmatpush3.bf16.msra.mxu0 %v1544_v34 }
 0x251   :  { %v707_v35 = vpop.f32.mrb[0].mxu0  ;;  %v750_v37 = vpop.f32.mrb[0].mxu1 }
 0x252   :  { %v800_v38 = vmax.f32 %v707_v35, 0.0  ;;  %v802_v39 = vmax.f32 %v750_v37, 0.0  ;;  %v709_v41 = vpop.f32.mrb[1].mxu0  ;;  %v752_v42 = vpop.f32.mrb[1].mxu1 }
 0x253   :  { %v801_v43 = vmax.f32 %v709_v41, 0.0  ;;  %v803_v44 = vmax.f32 %v752_v42, 0.0  ;;  %v711_v45 = vpop.f32.mrb[2].mxu0  ;;  %v754_v46 = vpop.f32.mrb[2].mxu1 }
 0x254   :  { %v804_v36 = vmax.f32 %v711_v45, 0.0  ;;  %v806_v47 = vmax.f32 %v754_v46, 0.0  ;;  %v713_v48 = vpop.f32.mrb[3].mxu0  ;;  %v756_v49 = vpop.f32.mrb[3].mxu1  ;;  %v808_v40 = vmul.f32 %v800_v38, %v800_v38  ;;  %v810_v52 = vmul.f32 %v802_v39, %v802_v39 }
 0x255   :  { %v805_v50 = vmax.f32 %v713_v48, 0.0  ;;  %v807_v51 = vmax.f32 %v756_v49, 0.0  ;;  %v809_v55 = vmul.f32 %v801_v43, %v801_v43  ;;  %v811_v56 = vmul.f32 %v803_v44, %v803_v44 }
 0x256   :  { %v812_v53 = vmul.f32 %v804_v36, %v804_v36  ;;  %v814_v54 = vmul.f32 %v806_v47, %v806_v47 }
 0x257   :  { %v813_v57 = vmul.f32 %v805_v50, %v805_v50  ;;  %v815_v58 = vmul.f32 %v807_v51, %v807_v51 }
 0x258   :  { %v816_v59 = vpack.c.bf16 %v812_v53, %v808_v40  ;;  %v818_v60 = vpack.c.bf16 %v814_v54, %v810_v52 }
 0x259   :  { %v817_v61 = vpack.c.bf16 %v813_v57, %v809_v55  ;;  %v819_v62 = vpack.c.bf16 %v815_v58, %v811_v56 }
 0x25b   :  { %1108 = vmatprep.mubr.bf16.mxu1 %v817_v61  ;;  %1149 = vmatprep.mubr.bf16.mxu0 %v819_v62 }
 0x25c   :  { %1109 = vmatmul.mubr.bf16.vlgmr.msra.gmra.mrb[4].mxu1 %v816_v59  ;;  %1150 = vmatmul.mubr.bf16.vlgmr.msra.gmra.mrb[8].mxu0 %v818_v60 }
 0x271   :  { %v1339_v63 = vpop.f32.mrb[4].mxu0 }
 0x272   :  { %v1340_v0 = vpop.f32.mrb[5].mxu0 }
 0x273   :  { %v1341_v1 = vadd.f32 %v1340_v0, %v1339_v63  ;;  %v1342_v2 = vpop.f32.mrb[6].mxu0 }
 0x274   :  { %v1343_v3 = vpop.f32.mrb[7].mxu0 }
 0x275   :  { %v1344_v4 = vadd.f32 %v1343_v3, %v1342_v2 }
 0x276   :  { %1636 = shalt.err (!%p1633_p0)
}
 0x277   :  { %s1637_s19 = scalar_lea.hbm %s1820_s6, 32 }
 0x278   :  { %p1638_p1 = scmp.ne.s32.totalorder %s1820_s6, %s1637_s19  ;;  %p1641_p2 = scmp.lt.u32.totalorder %s1637_s19, %s1820_s6 }
 0x27a   :  { %p1643_p3 = pnand %p1641_p2, %p1638_p1 }
 0x27c   :  { %1646 = shalt.err (!%p1643_p3)
}
 0x27d   :  { %1197 = dma.vmem_to_hbm [thread:$0]  %s1195_s2, 32, %s1820_s6, [#allocation10]   ;;  %v1321_v5 = vmul.f32 -1.442695, %v1341_v1  ;;  %v1322_v6 = vmul.f32 -1.442695, %v1344_v4 }
 0x27e   :  { %s1688_s6 = smov [#allocation8]   ;;  %v1557_v29 = vld [vmem:[#allocation2] sm:$0xff]  ;;  %v1558_v31 = vld [vmem:[#allocation2 + $0x8] sm:$0xff] }
 0x27f   :  { %1549 = vpow2.f32 %v1321_v5  ;;  %s1181_s27 = sshll.u32 %s1688_s6, 4  ;;  %s1182_s27 = int_to_ptr.vmem [resolvable:$true] %s1181_s27 }
 0x280   :  { %1551 = vpow2.f32 %v1322_v6  ;;  %s1647_s28 = scalar_lea.vmem %s1182_s27, 256  ;;  %p1652_p5 = scmp.lt.s32.totalorder %s1182_s27, %s1182_s27 }
 0x281   :  { %p1648_p4 = scmp.ne.s32.totalorder %s1182_s27, %s1647_s28  ;;  %p1653_p6 = scmp.lt.s32.totalorder %s1647_s28, %s1647_s28 }
 0x283   :  { %p1654_p7 = por %p1653_p6, %p1652_p5 }
 0x285   :  { %p1655_p8 = pnand %p1654_p7, %p1648_p4 }
 0x289   :  { %v1550_v7 = vpop.eup %1549 }
 0x28a   :  { %v1552_v8 = vpop.eup %1551  ;;  %v1164_v9 = vadd.f32 1.0, %v1550_v7 }
 0x28b   :  { %v1165_v10 = vadd.f32 1.0, %v1552_v8 }
 0x28c   :  { %1553 = vrcp.f32 %v1164_v9 }
 0x28d   :  { %1555 = vrcp.f32 %v1165_v10 }
 0x296   :  { %v1554_v24 = vpop.eup %1553 }
 0x297   :  { %v1556_v27 = vpop.eup %1555 }
 0x32f   :  { %v1361_v11 = vpop.f32.mrb[4].mxu1  ;;  %v1383_v12 = vpop.f32.mrb[8].mxu0 }
 0x330   :  { %v1362_v13 = vpop.f32.mrb[5].mxu1  ;;  %v1384_v14 = vpop.f32.mrb[9].mxu0 }
 0x331   :  { %v1363_v15 = vadd.f32 %v1362_v13, %v1361_v11  ;;  %v1385_v16 = vadd.f32 %v1384_v14, %v1383_v12  ;;  %v1364_v17 = vpop.f32.mrb[6].mxu1  ;;  %v1386_v18 = vpop.f32.mrb[10].mxu0 }
 0x332   :  { %v1365_v19 = vpop.f32.mrb[7].mxu1  ;;  %v1387_v20 = vpop.f32.mrb[11].mxu0 }
 0x333   :  { %v1152_v21 = vadd.f32 %v1385_v16, %v1363_v15  ;;  %v1366_v22 = vadd.f32 %v1365_v19, %v1364_v17  ;;  %v1388_v23 = vadd.f32 %v1387_v20, %v1386_v18 }
 0x335   :  { %v1170_v25 = vmul.f32 %v1554_v24, %v1152_v21  ;;  %v1155_v26 = vadd.f32 %v1388_v23, %v1366_v22 }
 0x337   :  { %v1171_v28 = vmul.f32 %v1556_v27, %v1155_v26  ;;  %v1172_v30 = vadd.f32 %v1557_v29, %v1170_v25 }
 0x339   :  { %v1173_v32 = vadd.f32 %v1558_v31, %v1171_v28  ;;  %1174 = vst [vmem:[#allocation8] sm:$0xff] %v1172_v30 }
 0x33b   :  { %1175 = vst [vmem:[#allocation8 + $0x8] sm:$0xff] %v1173_v32 }
 0x33c   :  { %1658 = shalt.err (!%p1655_p8)
}
 0x33d   :  { %s1659_s7 = scalar_lea.hbm %s1819_s5, 256 }
 0x33e   :  { %p1660_p9 = scmp.ne.s32.totalorder %s1819_s5, %s1659_s7  ;;  %p1663_p10 = scmp.lt.u32.totalorder %s1659_s7, %s1819_s5 }
 0x340   :  { %p1665_p11 = pnand %p1663_p10, %p1660_p9 }
 0x342   :  { %1668 = shalt.err (!%p1665_p11)
}
 0x343   :  { %1187 = dma.vmem_to_hbm [thread:$0]  %s1182_s27, 256, %s1819_s5, [#allocation4], %s1681_s3, %s1681_s3, %s1682_s21  }
 0x344   :  { %1673 = dma.done.wait [#allocation4], 256  }
 0x345   :  { %1674 = vsyncadd [#allocation4], 4294967040 }
 0x346   :  { %1675 = dma.done.wait [#allocation10], 32  }
 0x347   :  { %1676 = vsyncadd [#allocation10], 4294967264 }
 0x348   :  { %1204 = vsyncpa [#allocation3], 1 }
 0x349   :  { %1205 = vsyncpa [#allocation6], 1 }
 0x34a   :  { %1206 = vsyncpa [#allocation4], 1 }
 0x34b   :  { %1207 = vsyncpa [#allocation10], 1 }

// kernel: _channel_mixer_call.1
= control target key start
LH: loop header
LB: loop body
LE: loop exit
PB: predicated region body
PF: predicated region fallthrough
CT: control target
= control target key end

     0   :  { %12 = vsyncpa [#allocation3], 0  ;;  %s1814_s0 = inlined_call_operand.hbm [shape: f32[2,8,128], index: 0, kind: input, shape index: {}]   ;;  %s1815_s1 = inlined_call_operand.vmem [shape: f32[2,128], index: 1, kind: input, shape index: {}]   ;;  %s1816_s2 = inlined_call_operand.vmem [shape: f32[2,128], index: 2, kind: input, shape index: {}]   ;;  %s1817_s3 = inlined_call_operand.hbm [shape: bf16[256,640], index: 3, kind: input, shape index: {}]   ;;  %s1818_s4 = inlined_call_operand.hbm [shape: bf16[512,128], index: 4, kind: input, shape index: {}]   ;;  %s1819_s5 = inlined_call_operand.hbm [shape: f32[2,8,128], index: 5, kind: output, shape index: {0}]   ;;  %s1820_s6 = inlined_call_operand.hbm [shape: f32[2,128], index: 6, kind: output, shape index: {1}]  }
   0x1   :  { %13 = vsyncpa [#allocation6], 0 }
   0x2   :  { %14 = vsyncpa [#allocation4], 0 }
   0x3   :  { %15 = vsyncpa [#allocation10], 0  ;;  %s1677_s21 = smov [#allocation5]   ;;  %s1559_s25 = scalar_lea.hbm %s1817_s3, 10240 }
   0x4   :  { %s37_s22 = sshll.u32 %s1677_s21, 4  ;;  %p1560_p0 = scmp.ne.s32.totalorder %s1817_s3, %s1559_s25  ;;  %s38_s22 = int_to_ptr.vmem [resolvable:$true] %s37_s22 }
   0x5   :  { %p1563_p1 = scmp.lt.u32.totalorder %s1559_s25, %s1817_s3 }
   0x7   :  { %p1565_p2 = pnand %p1563_p1, %p1560_p0 }
   0x9   :  { %1568 = shalt.err (!%p1565_p2)
}
   0xa   :  { %s1569_s30 = scalar_lea.vmem %s38_s22, 10240  ;;  %p1574_p4 = scmp.lt.s32.totalorder %s38_s22, %s38_s22 }
   0xb   :  { %p1570_p3 = scmp.ne.s32.totalorder %s38_s22, %s1569_s30  ;;  %p1575_p5 = scmp.lt.s32.totalorder %s1569_s30, %s1569_s30 }
   0xd   :  { %p1576_p6 = por %p1575_p5, %p1574_p4 }
   0xf   :  { %p1577_p7 = pnand %p1576_p6, %p1570_p3 }
  0x11   :  { %1580 = shalt.err (!%p1577_p7)
}
  0x12   :  { %s1678_s7 = smov 320   ;;  %s1679_s8 = smov 20  }
  0x13   :  { %43 = dma.hbm_to_vmem [thread:$0]  %s1817_s3, 10240, %s38_s22, [#allocation6], %s1678_s7, %s1678_s7, %s1679_s8  }
  0x14   :  { %s1680_s11 = smov [#allocation2]   ;;  %s1581_s15 = scalar_lea.hbm %s1814_s0, 256 }
  0x15   :  { %s21_s12 = sshll.u32 %s1680_s11, 4  ;;  %p1582_p8 = scmp.ne.s32.totalorder %s1814_s0, %s1581_s15  ;;  %s22_s12 = int_to_ptr.vmem [resolvable:$true] %s21_s12 }
  0x16   :  { %p1585_p9 = scmp.lt.u32.totalorder %s1581_s15, %s1814_s0 }
  0x18   :  { %p1587_p10 = pnand %p1585_p9, %p1582_p8 }
  0x1a   :  { %1590 = shalt.err (!%p1587_p10)
}
  0x1b   :  { %s1591_s20 = scalar_lea.vmem %s22_s12, 256  ;;  %p1596_p12 = scmp.lt.s32.totalorder %s22_s12, %s22_s12 }
  0x1c   :  { %p1592_p11 = scmp.ne.s32.totalorder %s22_s12, %s1591_s20  ;;  %p1597_p13 = scmp.lt.s32.totalorder %s1591_s20, %s1591_s20 }
  0x1e   :  { %p1598_p0 = por %p1597_p13, %p1596_p12 }
  0x20   :  { %p1599_p1 = pnand %p1598_p0, %p1592_p11 }
  0x22   :  { %1602 = shalt.err (!%p1599_p1)
}
  0x23   :  { %s1681_s3 = smov 128   ;;  %s1682_s21 = smov 8  }
  0x24   :  { %27 = dma.hbm_to_vmem [thread:$0]  %s1814_s0, 256, %s22_s12, [#allocation3], %s1681_s3, %s1681_s3, %s1682_s21  }
  0x25   :  { %s1683_s24 = smov [#allocation7]   ;;  %s1603_s28 = scalar_lea.hbm %s1818_s4, 4096 }
  0x26   :  { %s49_s25 = sshll.u32 %s1683_s24, 4  ;;  %p1604_p2 = scmp.ne.s32.totalorder %s1818_s4, %s1603_s28  ;;  %s50_s25 = int_to_ptr.vmem [resolvable:$true] %s49_s25 }
  0x27   :  { %p1607_p3 = scmp.lt.u32.totalorder %s1603_s28, %s1818_s4 }
  0x29   :  { %p1609_p4 = pnand %p1607_p3, %p1604_p2 }
  0x2b   :  { %1612 = shalt.err (!%p1609_p4)
}
  0x2c   :  { %s1613_s9 = scalar_lea.vmem %s50_s25, 4096  ;;  %p1618_p6 = scmp.lt.s32.totalorder %s50_s25, %s50_s25 }
  0x2d   :  { %p1614_p5 = scmp.ne.s32.totalorder %s50_s25, %s1613_s9  ;;  %p1619_p7 = scmp.lt.s32.totalorder %s1613_s9, %s1613_s9 }
  0x2f   :  { %p1620_p8 = por %p1619_p7, %p1618_p6 }
  0x31   :  { %p1621_p9 = pnand %p1620_p8, %p1614_p5 }
  0x33   :  { %1624 = shalt.err (!%p1621_p9)
}
  0x34   :  { %s1684_s0 = smov 64   ;;  %s1685_s10 = smov 4  }
  0x35   :  { %55 = dma.hbm_to_vmem [thread:$0]  %s1818_s4, 4096, %s50_s25, [#allocation6], %s1684_s0, %s1684_s0, %s1685_s10  }
  0x36   :  { %1669 = dma.done.wait [#allocation3], 256  }
  0x37   :  { %1670 = vsyncadd [#allocation3], 4294967040 }
  0x38   :  { %1671 = dma.done.wait [#allocation6], 14336  }
  0x39   :  { %1672 = vsyncadd [#allocation6], 4294952960  ;;  %v1763_v0 = vld [vmem:[#allocation2] sm:$0xff]  ;;  %v1765_v1 = vld [vmem:[#allocation2 + $0x8] sm:$0xff] }
  0x3a   :  { %70 = vadd.xlane.f32.xlu0 %v1763_v0  ;;  %v1401_v2 = vld [vmem:[#allocation5 + $0x4] ss:$20 sps:$4 sm:$0xff]   ;;  %v1403_v3 = vld [vmem:[#allocation5] ss:$20 sps:$4 sm:$0xff]   ;;  %v1406_v5 = vld [vmem:[#allocation5 + $0x8] ss:$20 sps:$4 sm:$0xff]  }
  0x3b   :  { %v1404_v4 = vld [vmem:[#allocation5 + $0xc] ss:$20 sps:$4 sm:$0xff]   ;;  %673 = vmatprep.subr.bf16.mxu0 %v1401_v2  ;;  %v1410_v7 = vld [vmem:[#allocation5 + $0x34] ss:$20 sps:$4 sm:$0xff]   ;;  %v1412_v9 = vld [vmem:[#allocation5 + $0x30] ss:$20 sps:$4 sm:$0xff]  }
  0x3c   :  { %v1407_v6 = vld [vmem:[#allocation5 + $0x2c] ss:$20 sps:$4 sm:$0xff]   ;;  %716 = vmatprep.subr.bf16.mxu1 %v1404_v4  ;;  %674 = vmatpush1.bf16.msra.mxu0 %v1403_v3  ;;  %v1409_v8 = vld [vmem:[#allocation5 + $0x28] ss:$20 sps:$4 sm:$0xff]   ;;  %v1415_v12 = vld [vmem:[#allocation5 + $0x50] ss:$20 sps:$4 sm:$0xff]  }
  0x3d   :  { %717 = vmatpush1.bf16.msra.mxu1 %v1406_v5  ;;  %675 = vmatprep.subr.bf16.mxu0 %v1407_v6  ;;  %v1413_v10 = vld [vmem:[#allocation5 + $0x54] ss:$20 sps:$4 sm:$0xff]   ;;  %v1416_v11 = vld [vmem:[#allocation5 + $0x5c] ss:$20 sps:$4 sm:$0xff]   ;;  %v1418_v13 = vld [vmem:[#allocation5 + $0x58] ss:$20 sps:$4 sm:$0xff]  }
  0x3e   :  { %72 = vadd.xlane.f32.xlu0 %v1765_v1  ;;  %718 = vmatprep.subr.bf16.mxu1 %v1410_v7  ;;  %v1419_v14 = vld [vmem:[#allocation5 + $0x7c] ss:$20 sps:$4 sm:$0xff]   ;;  %v1422_v15 = vld [vmem:[#allocation5 + $0x84] ss:$20 sps:$4 sm:$0xff]   ;;  %v1424_v17 = vld [vmem:[#allocation5 + $0x80] ss:$20 sps:$4 sm:$0xff]  }
  0x3f   :  { %v1421_v16 = vld [vmem:[#allocation5 + $0x78] ss:$20 sps:$4 sm:$0xff]   ;;  %v1427_v20 = vld [vmem:[#allocation5 + $0xa0] ss:$20 sps:$4 sm:$0xff]   ;;  %v1430_v21 = vld [vmem:[#allocation5 + $0xa8] ss:$20 sps:$4 sm:$0xff]  }
  0x40   :  { %676 = vmatpush1.bf16.msra.mxu0 %v1409_v8  ;;  %v1425_v18 = vld [vmem:[#allocation5 + $0xa4] ss:$20 sps:$4 sm:$0xff]   ;;  %v1428_v19 = vld [vmem:[#allocation5 + $0xac] ss:$20 sps:$4 sm:$0xff]   ;;  %v1434_v23 = vld [vmem:[#allocation5 + $0xd4] ss:$20 sps:$4 sm:$0xff]  }
  0x41   :  { %719 = vmatpush1.bf16.msra.mxu1 %v1412_v9  ;;  %677 = vmatprep.subr.bf16.mxu0 %v1413_v10  ;;  %v1431_v22 = vld [vmem:[#allocation5 + $0xcc] ss:$20 sps:$4 sm:$0xff]   ;;  %v1433_v24 = vld [vmem:[#allocation5 + $0xc8] ss:$20 sps:$4 sm:$0xff]   ;;  %v1436_v25 = vld [vmem:[#allocation5 + $0xd0] ss:$20 sps:$4 sm:$0xff]  }
  0x42   :  { %720 = vmatprep.subr.bf16.mxu1 %v1416_v11  ;;  %v1437_v26 = vld [vmem:[#allocation5 + $0xf4] ss:$20 sps:$4 sm:$0xff]   ;;  %v1440_v27 = vld [vmem:[#allocation5 + $0xfc] ss:$20 sps:$4 sm:$0xff]   ;;  %v1442_v29 = vld [vmem:[#allocation5 + $0xf8] ss:$20 sps:$4 sm:$0xff]  }
  0x43   :  { %v1439_v28 = vld [vmem:[#allocation5 + $0xf0] ss:$20 sps:$4 sm:$0xff]   ;;  %v1445_v32 = vld [vmem:[#allocation5 + $0x118] ss:$20 sps:$4 sm:$0xff]   ;;  %v1448_v33 = vld [vmem:[#allocation5 + $0x120] ss:$20 sps:$4 sm:$0xff]  }
  0x44   :  { %678 = vmatpush1.bf16.msra.mxu0 %v1415_v12  ;;  %v1443_v30 = vld [vmem:[#allocation5 + $0x11c] ss:$20 sps:$4 sm:$0xff]   ;;  %v1446_v31 = vld [vmem:[#allocation5 + $0x124] ss:$20 sps:$4 sm:$0xff]   ;;  %v1451_v43 = vld [vmem:[#allocation5 + $0x140] ss:$20 sps:$4 sm:$0xff]  }
  0x45   :  { %721 = vmatpush1.bf16.msra.mxu1 %v1418_v13  ;;  %679 = vmatprep.subr.bf16.mxu0 %v1419_v14  ;;  %v1449_v42 = vld [vmem:[#allocation5 + $0x144] ss:$20 sps:$4 sm:$0xff]   ;;  %v1452_v44 = vld [vmem:[#allocation5 + $0x14c] ss:$20 sps:$4 sm:$0xff]   ;;  %v1454_v45 = vld [vmem:[#allocation5 + $0x148] ss:$20 sps:$4 sm:$0xff]   ;;  %v93_v14 = vlaneseq }
  0x46   :  { %722 = vmatprep.subr.bf16.mxu1 %v1422_v15  ;;  %v1455_v46 = vld [vmem:[#allocation5 + $0x16c] ss:$20 sps:$4 sm:$0xff]   ;;  %v1457_v47 = vld [vmem:[#allocation5 + $0x168] ss:$20 sps:$4 sm:$0xff]   ;;  %v1460_v49 = vld [vmem:[#allocation5 + $0x170] ss:$20 sps:$4 sm:$0xff]  }
  0x47   :  { %v1458_v48 = vld [vmem:[#allocation5 + $0x174] ss:$20 sps:$4 sm:$0xff]   ;;  %v1463_v51 = vld [vmem:[#allocation5 + $0x190] ss:$20 sps:$4 sm:$0xff]   ;;  %v1466_v53 = vld [vmem:[#allocation5 + $0x198] ss:$20 sps:$4 sm:$0xff]  }
  0x48   :  { %680 = vmatpush1.bf16.msra.mxu0 %v1421_v16  ;;  %v1461_v50 = vld [vmem:[#allocation5 + $0x194] ss:$20 sps:$4 sm:$0xff]   ;;  %v1464_v52 = vld [vmem:[#allocation5 + $0x19c] ss:$20 sps:$4 sm:$0xff]   ;;  %v1469_v55 = vld [vmem:[#allocation5 + $0x1b8] ss:$20 sps:$4 sm:$0xff]  }
  0x49   :  { %723 = vmatpush1.bf16.msra.mxu1 %v1424_v17  ;;  %681 = vmatprep.subr.bf16.mxu0 %v1425_v18  ;;  %v1467_v54 = vld [vmem:[#allocation5 + $0x1bc] ss:$20 sps:$4 sm:$0xff]   ;;  %v1470_v56 = vld [vmem:[#allocation5 + $0x1c4] ss:$20 sps:$4 sm:$0xff]   ;;  %v1472_v57 = vld [vmem:[#allocation5 + $0x1c0] ss:$20 sps:$4 sm:$0xff]  }
  0x4a   :  { %724 = vmatprep.subr.bf16.mxu1 %v1428_v19  ;;  %v1473_v58 = vld [vmem:[#allocation5 + $0x1e4] ss:$20 sps:$4 sm:$0xff]   ;;  %v1475_v59 = vld [vmem:[#allocation5 + $0x1e0] ss:$20 sps:$4 sm:$0xff]   ;;  %v1478_v61 = vld [vmem:[#allocation5 + $0x1e8] ss:$20 sps:$4 sm:$0xff]  }
  0x4b   :  { %v1476_v60 = vld [vmem:[#allocation5 + $0x1ec] ss:$20 sps:$4 sm:$0xff]   ;;  %v1481_v63 = vld [vmem:[#allocation5 + $0x208] ss:$20 sps:$4 sm:$0xff]   ;;  %v1487_v4 = vld [vmem:[#allocation5 + $0x230] ss:$20 sps:$4 sm:$0xff]  }
  0x4c   :  { %682 = vmatpush1.bf16.msra.mxu0 %v1427_v20  ;;  %v1479_v62 = vld [vmem:[#allocation5 + $0x20c] ss:$20 sps:$4 sm:$0xff]   ;;  %v1485_v2 = vld [vmem:[#allocation5 + $0x234] ss:$20 sps:$4 sm:$0xff]   ;;  %v1488_v3 = vld [vmem:[#allocation5 + $0x23c] ss:$20 sps:$4 sm:$0xff]  }
  0x4d   :  { %725 = vmatpush1.bf16.msra.mxu1 %v1430_v21  ;;  %683 = vmatprep.subr.bf16.mxu0 %v1431_v22  ;;  %v1490_v5 = vld [vmem:[#allocation5 + $0x238] ss:$20 sps:$4 sm:$0xff]   ;;  %v1491_v6 = vld [vmem:[#allocation5 + $0x25c] ss:$20 sps:$4 sm:$0xff]   ;;  %v1496_v9 = vld [vmem:[#allocation5 + $0x260] ss:$20 sps:$4 sm:$0xff]  }
  0x4e   :  { %726 = vmatprep.subr.bf16.mxu1 %v1434_v23  ;;  %v1494_v7 = vld [vmem:[#allocation5 + $0x264] ss:$20 sps:$4 sm:$0xff]   ;;  %v94_v18 = vshrl.u32 %v93_v14, 7  ;;  %v1686_v20 = vmov 1966171168  }
  0x4f   :  { %v1493_v8 = vld [vmem:[#allocation5 + $0x258] ss:$20 sps:$4 sm:$0xff]   ;;  %v1497_v10 = vld [vmem:[#allocation5 + $0x150] ss:$20 sps:$4 sm:$0xff]   ;;  %v130_v21 = vunpack.c.l.s4 %v1686_v20 }
  0x50   :  { %684 = vmatpush1.bf16.msra.mxu0 %v1433_v24  ;;  %v1513_v11 = vld [vmem:[#allocation7 + $0x40] sm:$0xff]   ;;  %v95_v22 = vsub.s32 0, %v94_v18  ;;  %v69_v23 = vld [vmem:[%s1816_s2] sm:$0x3]  ;;  %v101_v24 = vsub.s32 1, %v94_v18  ;;  %vm116_vm0 = vcmp.lt.s32.totalorder %v94_v18, 1 }
  0x51   :  { %727 = vmatpush1.bf16.msra.mxu1 %v1436_v25  ;;  %685 = vmatprep.subr.bf16.mxu0 %v1437_v26  ;;  %v131_v25 = vunpack.c.0.s8 %v130_v21  ;;  %v1208_v26 = vld.sshfl [vmem:[%s1815_s1] sm:$0x11 pattern:$0x75316420]  ;;  %vm119_vm1 = vcmp.eq.s32.totalorder %v94_v18, 0  ;;  %v1514_v14 = vld [vmem:[#allocation7 + $0xc0] sm:$0xff]  }
  0x52   :  { %728 = vmatprep.subr.bf16.mxu1 %v1440_v27  ;;  %v96_v27 = vrot.slane %v69_v23, %v95_v22  ;;  %v1526_v20 = vld [vmem:[#allocation7 + $0xd8] sm:$0xff]   ;;  %s1687_s1 = smov [#allocation9]  }
  0x53   :  { %v1528_v21 = vld [vmem:[#allocation7 + $0x98] sm:$0xff]   ;;  %s1194_s2 = sshll.u32 %s1687_s1, 4  ;;  %s1195_s2 = int_to_ptr.vmem [resolvable:$true] %s1194_s2 }
  0x54   :  { %686 = vmatpush1.bf16.msra.mxu0 %v1439_v28  ;;  %s1625_s16 = scalar_lea.vmem %s1195_s2, 32  ;;  %p1630_p11 = scmp.lt.s32.totalorder %s1195_s2, %s1195_s2 }
  0x55   :  { %729 = vmatpush1.bf16.msra.mxu1 %v1442_v29  ;;  %687 = vmatprep.subr.bf16.mxu0 %v1443_v30  ;;  %v102_v30 = vrot.slane %v69_v23, %v101_v24  ;;  %v1532_v23 = vld [vmem:[#allocation7 + $0xa0] sm:$0xff]   ;;  %v1534_v24 = vld [vmem:[#allocation7 + $0xe8] sm:$0xff]   ;;  %p1626_p10 = scmp.ne.s32.totalorder %s1195_s2, %s1625_s16  ;;  %p1631_p12 = scmp.lt.s32.totalorder %s1625_s16, %s1625_s16 }
  0x56   :  { %730 = vmatprep.subr.bf16.mxu1 %v1446_v31  ;;  %v128_v31 = vcombine.high %v1208_v26, %v1208_v26 }
  0x57   :  { %p1632_p13 = por %p1631_p12, %p1630_p11 }
  0x58   :  { %688 = vmatpush1.bf16.msra.mxu0 %v1445_v32  ;;  %v134_v32 = vsub.s32 %v131_v25, %v94_v18  ;;  %v1522_v18 = vld [vmem:[#allocation7 + $0xd0] sm:$0xff]   ;;  %v1535_v25 = vld [vmem:[#allocation7 + $0x28] sm:$0xff]  }
  0x59   :  { %731 = vmatpush1.bf16.msra.mxu1 %v1448_v33  ;;  %689 = vmatprep.subr.bf16.mxu0 %v1449_v42  ;;  %p1633_p0 = pnand %p1632_p13, %p1626_p10 }
  0x5a   :  { %732 = vmatprep.subr.bf16.mxu1 %v1452_v44 }
  0x5c   :  { %690 = vmatpush1.bf16.msra.mxu0 %v1451_v43 }
  0x5d   :  { %733 = vmatpush1.bf16.msra.mxu1 %v1454_v45  ;;  %691 = vmatprep.subr.bf16.mxu0 %v1455_v46 }
  0x5e   :  { %734 = vmatprep.subr.bf16.mxu1 %v1458_v48 }
  0x60   :  { %692 = vmatpush1.bf16.msra.mxu0 %v1457_v47 }
  0x61   :  { %735 = vmatpush1.bf16.msra.mxu1 %v1460_v49  ;;  %693 = vmatprep.subr.bf16.mxu0 %v1461_v50 }
  0x62   :  { %736 = vmatprep.subr.bf16.mxu1 %v1464_v52  ;;  %v1498_v52 = vld [vmem:[#allocation5 + $0x10] ss:$20 sps:$4 sm:$0xff]  }
  0x64   :  { %694 = vmatpush1.bf16.msra.mxu0 %v1463_v51 }
  0x65   :  { %737 = vmatpush1.bf16.msra.mxu1 %v1466_v53  ;;  %695 = vmatprep.subr.bf16.mxu0 %v1467_v54  ;;  %v1499_v54 = vld [vmem:[#allocation5 + $0x178] ss:$20 sps:$4 sm:$0xff]  }
  0x66   :  { %738 = vmatprep.subr.bf16.mxu1 %v1470_v56  ;;  %v1517_v56 = vld [vmem:[#allocation7 + $0x48] sm:$0xff]  }
  0x68   :  { %696 = vmatpush1.bf16.msra.mxu0 %v1469_v55  ;;  %v1515_v55 = vld [vmem:[#allocation7] sm:$0xff]  }
  0x69   :  { %739 = vmatpush1.bf16.msra.mxu1 %v1472_v57  ;;  %697 = vmatprep.subr.bf16.mxu0 %v1473_v58  ;;  %v1500_v57 = vld [vmem:[#allocation5 + $0x38] ss:$20 sps:$4 sm:$0xff]   ;;  %v1501_v58 = vld [vmem:[#allocation5 + $0x1a0] ss:$20 sps:$4 sm:$0xff]  }
  0x6a   :  { %740 = vmatprep.subr.bf16.mxu1 %v1476_v60  ;;  %v1521_v60 = vld [vmem:[#allocation7 + $0x50] sm:$0xff]  }
  0x6c   :  { %698 = vmatpush1.bf16.msra.mxu0 %v1475_v59  ;;  %v1519_v59 = vld [vmem:[#allocation7 + $0x8] sm:$0xff]  }
  0x6d   :  { %741 = vmatpush1.bf16.msra.mxu1 %v1478_v61  ;;  %699 = vmatprep.subr.bf16.mxu0 %v1479_v62  ;;  %v1502_v61 = vld [vmem:[#allocation5 + $0x60] ss:$20 sps:$4 sm:$0xff]   ;;  %v1503_v62 = vld [vmem:[#allocation5 + $0x1c8] ss:$20 sps:$4 sm:$0xff]  }
  0x70   :  { %700 = vmatpush1.bf16.msra.mxu0 %v1481_v63  ;;  %v1523_v63 = vld [vmem:[#allocation7 + $0x10] sm:$0xff]  }
  0x71   :  { %701 = vmatprep.subr.bf16.mxu0 %v1485_v2  ;;  %v1505_v2 = vld [vmem:[#allocation5 + $0x1f0] ss:$20 sps:$4 sm:$0xff]  }
  0x74   :  { %702 = vmatpush1.bf16.msra.mxu0 %v1487_v4  ;;  %v1529_v4 = vld [vmem:[#allocation7 + $0x60] sm:$0xff]  }
  0x75   :  { %703 = vmatprep.subr.bf16.mxu0 %v1491_v6  ;;  %v1507_v6 = vld [vmem:[#allocation5 + $0x218] ss:$20 sps:$4 sm:$0xff]  }
  0x78   :  { %704 = vmatpush1.bf16.msra.mxu0 %v1493_v8  ;;  %v1533_v8 = vld [vmem:[#allocation7 + $0x68] sm:$0xff]  }
  0x79   :  { %1323 = vmatprep.subr.bf16.mxu0 %v1497_v10  ;;  %v1509_v10 = vld [vmem:[#allocation5 + $0x240] ss:$20 sps:$4 sm:$0xff]  }
  0xc7   :  { %v71_v34 = vpop.xlane.xlu0 %70 }
  0xc8   :  { %v75_v35 = vmul.f32 0.0078125, %v71_v34 }
  0xca   :  { %v1770_v36 = vsub.f32 %v1763_v0, %v75_v35  ;;  %v1482_v0 = vld [vmem:[#allocation5 + $0x214] ss:$20 sps:$4 sm:$0xff]  }
  0xcb   :  { %v73_v37 = vpop.xlane.xlu0 %72  ;;  %742 = vmatprep.subr.bf16.mxu1 %v1482_v0  ;;  %v1525_v0 = vld [vmem:[#allocation7 + $0x58] sm:$0xff]  }
  0xcc   :  { %v76_v38 = vmul.f32 0.0078125, %v73_v37  ;;  %v79_v39 = vmul.f32 %v1770_v36, %v1770_v36 }
  0xce   :  { %v1775_v40 = vsub.f32 %v1765_v1, %v76_v38  ;;  %81 = vadd.xlane.f32.xlu1 %v79_v39  ;;  %v1484_v1 = vld [vmem:[#allocation5 + $0x210] ss:$20 sps:$4 sm:$0xff]   ;;  %v135_v38 = vrot.slane %v1208_v26, %v134_v32  ;;  %v142_v39 = vrot.slane %v128_v31, %v134_v32  ;;  %v1536_v26 = vld [vmem:[#allocation7 + $0xa8] sm:$0xff]   ;;  %v1541_v31 = vld [vmem:[#allocation7 + $0x78] sm:$0xff]  }
  0xcf   :  { %743 = vmatpush1.bf16.msra.mxu1 %v1484_v1  ;;  %v1504_v1 = vld [vmem:[#allocation5 + $0x88] ss:$20 sps:$4 sm:$0xff]  }
  0xd0   :  { %v80_v41 = vmul.f32 %v1775_v40, %v1775_v40  ;;  %744 = vmatprep.subr.bf16.mxu1 %v1488_v3  ;;  %v148_v43 = vrot.slane %v135_v38, %v95_v22  ;;  %v152_v44 = vrot.slane %v142_v39, %v95_v22  ;;  %v1527_v3 = vld [vmem:[#allocation7 + $0x18] sm:$0xff]   ;;  %v1530_v22 = vld [vmem:[#allocation7 + $0xe0] sm:$0xff]  }
  0xd1   :  { %v1542_v32 = vld [vmem:[#allocation7 + $0xf8] sm:$0xff]  }
  0xd2   :  { %83 = vadd.xlane.f32.xlu1 %v80_v41 }
  0xd3   :  { %745 = vmatpush1.bf16.msra.mxu1 %v1490_v5  ;;  %v1506_v5 = vld [vmem:[#allocation5 + $0xb0] ss:$20 sps:$4 sm:$0xff]  }
  0xd4   :  { %746 = vmatprep.subr.bf16.mxu1 %v1494_v7  ;;  %v1531_v7 = vld [vmem:[#allocation7 + $0x20] sm:$0xff]  }
  0xd7   :  { %747 = vmatpush1.bf16.msra.mxu1 %v1496_v9  ;;  %v1508_v9 = vld [vmem:[#allocation5 + $0xd8] ss:$20 sps:$4 sm:$0xff]  }
  0xd8   :  { %1345 = vmatprep.subr.bf16.mxu1 %v1513_v11  ;;  %v1510_v11 = vld [vmem:[#allocation5 + $0x100] ss:$20 sps:$4 sm:$0xff]  }
 0x15b   :  { %v82_v12 = vpop.xlane.xlu1 %81 }
 0x15c   :  { %v85_v13 = vmul.f32 0.0078125, %v82_v12  ;;  %v1511_v12 = vld [vmem:[#allocation5 + $0x268] ss:$20 sps:$4 sm:$0xff]  }
 0x15e   :  { %v87_v15 = vadd.f32 1e-05, %v85_v13  ;;  %v1512_v13 = vld [vmem:[#allocation5 + $0x128] ss:$20 sps:$4 sm:$0xff]  }
 0x15f   :  { %v84_v16 = vpop.xlane.xlu1 %83 }
 0x160   :  { %1545 = vrsqrt.f32 %v87_v15  ;;  %v86_v17 = vmul.f32 0.0078125, %v84_v16  ;;  %v1516_v15 = vld [vmem:[#allocation7 + $0x80] sm:$0xff]   ;;  %v1518_v16 = vld [vmem:[#allocation7 + $0xc8] sm:$0xff]  }
 0x162   :  { %v88_v19 = vadd.f32 1e-05, %v86_v17  ;;  %v1520_v17 = vld [vmem:[#allocation7 + $0x88] sm:$0xff]  }
 0x164   :  { %1547 = vrsqrt.f32 %v88_v19  ;;  %v1524_v19 = vld [vmem:[#allocation7 + $0x90] sm:$0xff]  }
 0x16a   :  { %v1546_v28 = vpop.eup %1545 }
 0x16b   :  { %v91_v29 = vmul.f32 %v1546_v28, %v1770_v36  ;;  %v1538_v28 = vld [vmem:[#allocation7 + $0xf0] sm:$0xff]  }
 0x16d   :  { %v97_v33 = vmul.f32 %v96_v27, %v91_v29  ;;  %v1539_v29 = vld [vmem:[#allocation7 + $0x30] sm:$0xff]  }
 0x16e   :  { %v1548_v34 = vpop.eup %1547 }
 0x16f   :  { %v92_v35 = vmul.f32 %v1548_v34, %v1775_v40  ;;  %v103_v37 = vadd.f32 %v102_v30, %v97_v33  ;;  %v1543_v33 = vld [vmem:[#allocation7 + $0x38] sm:$0xff]  }
 0x170   :  { %v1544_v34 = vld [vmem:[#allocation7 + $0xb8] sm:$0xff]  }
 0x171   :  { %v98_v41 = vmul.f32 %v96_v27, %v92_v35  ;;  %110 = vst [vmem:[#allocation9 - $0x7] sm:$0x80] %v103_v37  ;;  %v112_v46 = vrot.slane %v103_v37, 7  ;;  %v1537_v27 = vld [vmem:[#allocation7 + $0x70] sm:$0xff]  }
 0x173   :  { %v104_v42 = vadd.f32 %v102_v30, %v98_v41  ;;  %v1540_v30 = vld [vmem:[#allocation7 + $0xb0] sm:$0xff]  }
 0x175   :  { %v107_v45 = vrot.slane %v104_v42, 7 }
 0x177   :  { %v117_v36 = vsel %vm116_vm0, %v112_v46, %v107_v45  ;;  %v118_v47 = vsel %vm116_vm0, %v107_v45, %v112_v46  ;;  %111 = vst [vmem:[#allocation9 + $0x1] sm:$0x1] %v107_v45 }
 0x178   :  { %v155_v48 = vsel %vm119_vm1, %v148_v43, %v118_v47  ;;  %v156_v49 = vsel %vm119_vm1, %v152_v44, %v117_v36 }
 0x179   :  { %v157_v50 = vsub.f32 %v103_v37, %v155_v48  ;;  %v158_v51 = vsub.f32 %v104_v42, %v156_v49  ;;  %v159_v53 = vpack.c.bf16 %v156_v49, %v155_v48 }
 0x17b   :  { %v160_v40 = vpack.c.bf16 %v158_v51, %v157_v50 }
 0x17d   :  { %705 = vmatprep.mubr.bf16.mxu0 %v160_v40  ;;  %748 = vmatprep.mubr.bf16.mxu1 %v160_v40 }
 0x17e   :  { %706 = vmatmul.mubr.bf16.vlgmr.msra.gmra.mrb[0].mxu0 %v159_v53  ;;  %749 = vmatmul.mubr.bf16.vlgmr.msra.gmra.mrb[0].mxu1 %v159_v53 }
 0x17f   :  { %1324 = vmatpush3.bf16.msra.mxu0 %v1498_v52  ;;  %791 = vmatprep.mubr.bf16.mxu0 %v160_v40 }
 0x180   :  { %1325 = vmatprep.subr.bf16.mxu0 %v1499_v54  ;;  %1346 = vmatpush3.bf16.msra.mxu1 %v1515_v55 }
 0x181   :  { %1347 = vmatprep.subr.bf16.mxu1 %v1517_v56 }
 0x183   :  { %1326 = vmatpush3.bf16.msra.mxu0 %v1500_v57 }
 0x184   :  { %1327 = vmatprep.subr.bf16.mxu0 %v1501_v58  ;;  %1348 = vmatpush3.bf16.msra.mxu1 %v1519_v59 }
 0x185   :  { %1349 = vmatprep.subr.bf16.mxu1 %v1521_v60 }
 0x187   :  { %1328 = vmatpush3.bf16.msra.mxu0 %v1502_v61 }
 0x188   :  { %1329 = vmatprep.subr.bf16.mxu0 %v1503_v62  ;;  %1350 = vmatpush3.bf16.msra.mxu1 %v1523_v63 }
 0x189   :  { %1351 = vmatprep.subr.bf16.mxu1 %v1525_v0 }
 0x18b   :  { %1330 = vmatpush3.bf16.msra.mxu0 %v1504_v1 }
 0x18c   :  { %1331 = vmatprep.subr.bf16.mxu0 %v1505_v2  ;;  %1352 = vmatpush3.bf16.msra.mxu1 %v1527_v3 }
 0x18d   :  { %1353 = vmatprep.subr.bf16.mxu1 %v1529_v4 }
 0x18f   :  { %1332 = vmatpush3.bf16.msra.mxu0 %v1506_v5 }
 0x190   :  { %1333 = vmatprep.subr.bf16.mxu0 %v1507_v6  ;;  %1354 = vmatpush3.bf16.msra.mxu1 %v1531_v7 }
 0x191   :  { %1355 = vmatprep.subr.bf16.mxu1 %v1533_v8 }
 0x193   :  { %1334 = vmatpush3.bf16.msra.mxu0 %v1508_v9 }
 0x194   :  { %1335 = vmatprep.subr.bf16.mxu0 %v1509_v10  ;;  %1356 = vmatpush3.bf16.msra.mxu1 %v1535_v25 }
 0x195   :  { %1357 = vmatprep.subr.bf16.mxu1 %v1537_v27 }
 0x197   :  { %1336 = vmatpush3.bf16.msra.mxu0 %v1510_v11 }
 0x198   :  { %1337 = vmatprep.subr.bf16.mxu0 %v1511_v12  ;;  %1358 = vmatpush3.bf16.msra.mxu1 %v1539_v29 }
 0x199   :  { %1359 = vmatprep.subr.bf16.mxu1 %v1541_v31 }
 0x19b   :  { %1338 = vmatpush3.bf16.msra.mxu0 %v1512_v13 }
 0x19c   :  { %1367 = vmatprep.subr.bf16.mxu0 %v1514_v14  ;;  %1360 = vmatpush3.bf16.msra.mxu1 %v1543_v33 }
 0x19e   :  { %792 = vmatmul.mubr.bf16.vlgmr.msra.gmra.mrb[4].mxu0 %v159_v53 }
 0x19f   :  { %1368 = vmatpush3.bf16.msra.mxu0 %v1516_v15 }
 0x1a0   :  { %1369 = vmatprep.subr.bf16.mxu0 %v1518_v16 }
 0x1a3   :  { %1370 = vmatpush3.bf16.msra.mxu0 %v1520_v17 }
 0x1a4   :  { %1371 = vmatprep.subr.bf16.mxu0 %v1522_v18 }
 0x1a7   :  { %1372 = vmatpush3.bf16.msra.mxu0 %v1524_v19 }
 0x1a8   :  { %1373 = vmatprep.subr.bf16.mxu0 %v1526_v20 }
 0x1ab   :  { %1374 = vmatpush3.bf16.msra.mxu0 %v1528_v21 }
 0x1ac   :  { %1375 = vmatprep.subr.bf16.mxu0 %v1530_v22 }
 0x1af   :  { %1376 = vmatpush3.bf16.msra.mxu0 %v1532_v23 }
 0x1b0   :  { %1377 = vmatprep.subr.bf16.mxu0 %v1534_v24 }
 0x1b3   :  { %1378 = vmatpush3.bf16.msra.mxu0 %v1536_v26 }
 0x1b4   :  { %1379 = vmatprep.subr.bf16.mxu0 %v1538_v28 }
 0x1b7   :  { %1380 = vmatpush3.bf16.msra.mxu0 %v1540_v30 }
 0x1b8   :  { %1381 = vmatprep.subr.bf16.mxu0 %v1542_v32 }
 0x1bb   :  { %1382 = vmatpush3.bf16.msra.mxu0 %v1544_v34 }
 0x251   :  { %v707_v35 = vpop.f32.mrb[0].mxu0  ;;  %v750_v37 = vpop.f32.mrb[0].mxu1 }
 0x252   :  { %v800_v38 = vmax.f32 %v707_v35, 0.0  ;;  %v802_v39 = vmax.f32 %v750_v37, 0.0  ;;  %v709_v41 = vpop.f32.mrb[1].mxu0  ;;  %v752_v42 = vpop.f32.mrb[1].mxu1 }
 0x253   :  { %v801_v43 = vmax.f32 %v709_v41, 0.0  ;;  %v803_v44 = vmax.f32 %v752_v42, 0.0  ;;  %v711_v45 = vpop.f32.mrb[2].mxu0  ;;  %v754_v46 = vpop.f32.mrb[2].mxu1 }
 0x254   :  { %v804_v36 = vmax.f32 %v711_v45, 0.0  ;;  %v806_v47 = vmax.f32 %v754_v46, 0.0  ;;  %v713_v48 = vpop.f32.mrb[3].mxu0  ;;  %v756_v49 = vpop.f32.mrb[3].mxu1  ;;  %v808_v40 = vmul.f32 %v800_v38, %v800_v38  ;;  %v810_v52 = vmul.f32 %v802_v39, %v802_v39 }
 0x255   :  { %v805_v50 = vmax.f32 %v713_v48, 0.0  ;;  %v807_v51 = vmax.f32 %v756_v49, 0.0  ;;  %v809_v55 = vmul.f32 %v801_v43, %v801_v43  ;;  %v811_v56 = vmul.f32 %v803_v44, %v803_v44 }
 0x256   :  { %v812_v53 = vmul.f32 %v804_v36, %v804_v36  ;;  %v814_v54 = vmul.f32 %v806_v47, %v806_v47 }
 0x257   :  { %v813_v57 = vmul.f32 %v805_v50, %v805_v50  ;;  %v815_v58 = vmul.f32 %v807_v51, %v807_v51 }
 0x258   :  { %v816_v59 = vpack.c.bf16 %v812_v53, %v808_v40  ;;  %v818_v60 = vpack.c.bf16 %v814_v54, %v810_v52 }
 0x259   :  { %v817_v61 = vpack.c.bf16 %v813_v57, %v809_v55  ;;  %v819_v62 = vpack.c.bf16 %v815_v58, %v811_v56 }
 0x25b   :  { %1108 = vmatprep.mubr.bf16.mxu1 %v817_v61  ;;  %1149 = vmatprep.mubr.bf16.mxu0 %v819_v62 }
 0x25c   :  { %1109 = vmatmul.mubr.bf16.vlgmr.msra.gmra.mrb[4].mxu1 %v816_v59  ;;  %1150 = vmatmul.mubr.bf16.vlgmr.msra.gmra.mrb[8].mxu0 %v818_v60 }
 0x271   :  { %v1339_v63 = vpop.f32.mrb[4].mxu0 }
 0x272   :  { %v1340_v0 = vpop.f32.mrb[5].mxu0 }
 0x273   :  { %v1341_v1 = vadd.f32 %v1340_v0, %v1339_v63  ;;  %v1342_v2 = vpop.f32.mrb[6].mxu0 }
 0x274   :  { %v1343_v3 = vpop.f32.mrb[7].mxu0 }
 0x275   :  { %v1344_v4 = vadd.f32 %v1343_v3, %v1342_v2 }
 0x276   :  { %1636 = shalt.err (!%p1633_p0)
}
 0x277   :  { %s1637_s19 = scalar_lea.hbm %s1820_s6, 32 }
 0x278   :  { %p1638_p1 = scmp.ne.s32.totalorder %s1820_s6, %s1637_s19  ;;  %p1641_p2 = scmp.lt.u32.totalorder %s1637_s19, %s1820_s6 }
 0x27a   :  { %p1643_p3 = pnand %p1641_p2, %p1638_p1 }
 0x27c   :  { %1646 = shalt.err (!%p1643_p3)
}
 0x27d   :  { %1197 = dma.vmem_to_hbm [thread:$0]  %s1195_s2, 32, %s1820_s6, [#allocation10]   ;;  %v1321_v5 = vmul.f32 -1.442695, %v1341_v1  ;;  %v1322_v6 = vmul.f32 -1.442695, %v1344_v4 }
 0x27e   :  { %s1688_s6 = smov [#allocation8]   ;;  %v1557_v29 = vld [vmem:[#allocation2] sm:$0xff]  ;;  %v1558_v31 = vld [vmem:[#allocation2 + $0x8] sm:$0xff] }
 0x27f   :  { %1549 = vpow2.f32 %v1321_v5  ;;  %s1181_s27 = sshll.u32 %s1688_s6, 4  ;;  %s1182_s27 = int_to_ptr.vmem [resolvable:$true] %s1181_s27 }
 0x280   :  { %1551 = vpow2.f32 %v1322_v6  ;;  %s1647_s28 = scalar_lea.vmem %s1182_s27, 256  ;;  %p1652_p5 = scmp.lt.s32.totalorder %s1182_s27, %s1182_s27 }
 0x281   :  { %p1648_p4 = scmp.ne.s32.totalorder %s1182_s27, %s1647_s28  ;;  %p1653_p6 = scmp.lt.s32.totalorder %s1647_s28, %s1647_s28 }
 0x283   :  { %p1654_p7 = por %p1653_p6, %p1652_p5 }
 0x285   :  { %p1655_p8 = pnand %p1654_p7, %p1648_p4 }
 0x289   :  { %v1550_v7 = vpop.eup %1549 }
 0x28a   :  { %v1552_v8 = vpop.eup %1551  ;;  %v1164_v9 = vadd.f32 1.0, %v1550_v7 }
 0x28b   :  { %v1165_v10 = vadd.f32 1.0, %v1552_v8 }
 0x28c   :  { %1553 = vrcp.f32 %v1164_v9 }
 0x28d   :  { %1555 = vrcp.f32 %v1165_v10 }
 0x296   :  { %v1554_v24 = vpop.eup %1553 }
 0x297   :  { %v1556_v27 = vpop.eup %1555 }
 0x32f   :  { %v1361_v11 = vpop.f32.mrb[4].mxu1  ;;  %v1383_v12 = vpop.f32.mrb[8].mxu0 }
 0x330   :  { %v1362_v13 = vpop.f32.mrb[5].mxu1  ;;  %v1384_v14 = vpop.f32.mrb[9].mxu0 }
 0x331   :  { %v1363_v15 = vadd.f32 %v1362_v13, %v1361_v11  ;;  %v1385_v16 = vadd.f32 %v1384_v14, %v1383_v12  ;;  %v1364_v17 = vpop.f32.mrb[6].mxu1  ;;  %v1386_v18 = vpop.f32.mrb[10].mxu0 }
 0x332   :  { %v1365_v19 = vpop.f32.mrb[7].mxu1  ;;  %v1387_v20 = vpop.f32.mrb[11].mxu0 }
 0x333   :  { %v1152_v21 = vadd.f32 %v1385_v16, %v1363_v15  ;;  %v1366_v22 = vadd.f32 %v1365_v19, %v1364_v17  ;;  %v1388_v23 = vadd.f32 %v1387_v20, %v1386_v18 }
 0x335   :  { %v1170_v25 = vmul.f32 %v1554_v24, %v1152_v21  ;;  %v1155_v26 = vadd.f32 %v1388_v23, %v1366_v22 }
 0x337   :  { %v1171_v28 = vmul.f32 %v1556_v27, %v1155_v26  ;;  %v1172_v30 = vadd.f32 %v1557_v29, %v1170_v25 }
 0x339   :  { %v1173_v32 = vadd.f32 %v1558_v31, %v1171_v28  ;;  %1174 = vst [vmem:[#allocation8] sm:$0xff] %v1172_v30 }
 0x33b   :  { %1175 = vst [vmem:[#allocation8 + $0x8] sm:$0xff] %v1173_v32 }
 0x33c   :  { %1658 = shalt.err (!%p1655_p8)
}
 0x33d   :  { %s1659_s7 = scalar_lea.hbm %s1819_s5, 256 }
 0x33e   :  { %p1660_p9 = scmp.ne.s32.totalorder %s1819_s5, %s1659_s7  ;;  %p1663_p10 = scmp.lt.u32.totalorder %s1659_s7, %s1819_s5 }
 0x340   :  { %p1665_p11 = pnand %p1663_p10, %p1660_p9 }
 0x342   :  { %1668 = shalt.err (!%p1665_p11)
}
 0x343   :  { %1187 = dma.vmem_to_hbm [thread:$0]  %s1182_s27, 256, %s1819_s5, [#allocation4], %s1681_s3, %s1681_s3, %s1682_s21  }
 0x344   :  { %1673 = dma.done.wait [#allocation4], 256  }
 0x345   :  { %1674 = vsyncadd [#allocation4], 4294967040 }
 0x346   :  { %1675 = dma.done.wait [#allocation10], 32  }
 0x347   :  { %1676 = vsyncadd [#allocation10], 4294967264 }
 0x348   :  { %1204 = vsyncpa [#allocation3], 1 }
 0x349   :  { %1205 = vsyncpa [#allocation6], 1 }
 0x34a   :  { %1206 = vsyncpa [#allocation4], 1 }
 0x34b   :  { %1207 = vsyncpa [#allocation10], 1 }

</bundles_post_ra>
